<compile_context>
chip_gen: v6e
topology: v6e:2x2x1
jax: 0.10.0
libtpu: 0.0.40
codegen_flags: <defaults>
</compile_context>

<pallas_src>
from functools import partial

import numpy as np
import jax
import jax.numpy as jnp
from jax import lax
from jax.experimental import pallas as pl
from jax.experimental.pallas import tpu as pltpu

K1, K2, K3 = 40, 20, 10          # branch kernel widths
P1, P2, P3 = 15, 5, 0            # branch paddings (width axis)
PAD = max(P1, P2, P3)            # global pad applied to the input (15)
KMAX = K1                        # all branches embedded in a 40-tap window
CO_BRANCH = 32
CO_TOTAL = 3 * CO_BRANCH         # 96 concatenated channels
BN_EPS = 1e-5
LANE = 128


def _round_up(x, m):
    return -(-x // m) * m


def _make_kernel(gp, apply_scale):
    """Kernel: one lane-dense matmul + fused epilogue.

    x_ref: (TM, C*W_pad)   bf16, padded rows, (C, W) flattened onto lanes
    w_ref: (C*W_pad, 3*GP) bf16, conv window unrolled + BN-scale folded
    p_ref: (2|3, 3*GP)     f32, packed [bias, (scale), shift]
    o_ref: (TM, GP)        f32, pooled output, column = o*W_out + w
    """
    shift_row = 2 if apply_scale else 1

    def kernel(x_ref, w_ref, p_ref, o_ref):
        # Single MXU matmul, contraction = C*W_pad (>= 160), f32 accumulation.
        acc = jnp.dot(x_ref[...], w_ref[...],
                      preferred_element_type=jnp.float32)      # (TM, 3*GP)
        z = jnp.maximum(acc + p_ref[0:1, :], 0.0)               # conv bias + ReLU
        if apply_scale:                                         # BN-fold fallback only
            z = z * p_ref[1:2, :]
        y = z + p_ref[shift_row:shift_row + 1, :]               # BN shift (eval mode)
        # MaxPool3d((3,1,1)): channels pre-permuted so the pool is an
        # elementwise max of three lane-aligned GP-wide slabs.
        pooled = jnp.maximum(jnp.maximum(y[:, :gp], y[:, gp:2 * gp]),
                             y[:, 2 * gp:3 * gp])
        o_ref[...] = pooled.astype(o_ref.dtype)

    return kernel


@partial(jax.jit, static_argnames=("tm",))
def inception_block(x, w_big, p_pack, *, tm=None):
    """x: (N, C, H, W) float32 NCHW.  Returns (N, 32, H, W-9) float32."""
    n, c, h, w = x.shape
    w_out = w - (K3 - 1)                       # = W - 9, same for all branches
    gp = _round_up(CO_BRANCH * w_out, LANE)
    wp = w + 2 * PAD
    m = n * h

    if tm is None:
        # Big enough to amortize the ~0.35 us/step pipeline overhead, small
        # enough for v7x's 64 MiB VMEM; v5e/v6e can go 512-1024.
        tm = max(8, min(256, (m // 8) * 8))
    assert tm % 8 == 0, tm
    assert w_big.shape == (c * wp, 3 * gp), (w_big.shape, (c * wp, 3 * gp))

    # NCHW -> (M, C, W) rows (lane axis W preserved through the transpose)
    # -> zero-pad W -> flatten (C, W_pad) onto lanes, bf16.  Done inside the
    # same jit so XLA fuses transpose+pad+reshape+cast into a single
    # materialized copy of the activation (no extra HBM round trips).
    xr = jnp.transpose(x, (0, 2, 1, 3)).reshape(m, c, w)
    xr = jnp.pad(xr, ((0, 0), (0, 0), (PAD, PAD)))
    xr = xr.reshape(m, c * wp).astype(jnp.bfloat16)

    mp = _round_up(m, tm)
    if mp != m:                                 # pad rows to a whole grid
        xr = jnp.pad(xr, ((0, mp - m), (0, 0)))

    rows = p_pack.shape[0]
    kernel = _make_kernel(gp, apply_scale=(rows == 3))

    flops = 2 * mp * (c * wp) * (3 * gp)
    bytes_accessed = (mp * c * wp * 2           # activations (bf16)
                      + c * wp * 3 * gp * 2     # folded weights (bf16)
                      + rows * 3 * gp * 4       # packed per-channel params
                      + mp * gp * 4)            # pooled output (f32)

    out = pl.pallas_call(
        kernel,
        out_shape=jax.ShapeDtypeStruct((mp, gp), jnp.float32),
        grid=(mp // tm,),
        in_specs=[
            pl.BlockSpec((tm, c * wp), lambda i: (i, 0)),       # lane-dense rows
            pl.BlockSpec((c * wp, 3 * gp), lambda i: (0, 0)),   # resident weights
            pl.BlockSpec((rows, 3 * gp), lambda i: (0, 0)),     # packed bias/(scale)/shift
        ],
        out_specs=pl.BlockSpec((tm, gp), lambda i: (i, 0)),     # lane-dense output
        compiler_params=pltpu.CompilerParams(
            dimension_semantics=("parallel",)),
        cost_estimate=pl.CostEstimate(flops=int(flops), transcendentals=0,
                                      bytes_accessed=int(bytes_accessed)),
    )(xr, w_big, p_pack)

    # (MP, GP) -> crop padding -> (N, 32, H, W_out); output column = o*W_out+w.
    out = out[:m, :CO_BRANCH * w_out].reshape(n, h, CO_BRANCH, w_out)
    return jnp.transpose(out, (0, 2, 1, 3))


def init_params(key, c_in):
    """Deterministic synthetic parameters mirroring the module's shapes."""
    keys = jax.random.split(key, 18)
    ki = iter(range(18))

    def conv_init(ksize):
        fan_in = c_in * ksize
        wgt = jax.random.normal(keys[next(ki)], (CO_BRANCH, c_in, 1, ksize),
                                jnp.float32) / np.sqrt(fan_in)
        bias = jax.random.normal(keys[next(ki)], (CO_BRANCH,),
                                 jnp.float32) * 0.05
        return wgt, bias

    def bn_init():
        gamma = jax.random.uniform(keys[next(ki)], (CO_BRANCH,), jnp.float32,
                                   0.5, 1.5)
        beta = jax.random.normal(keys[next(ki)], (CO_BRANCH,),
                                 jnp.float32) * 0.1
        mean = jax.random.normal(keys[next(ki)], (CO_BRANCH,),
                                 jnp.float32) * 0.1
        var = jax.random.uniform(keys[next(ki)], (CO_BRANCH,), jnp.float32,
                                 0.5, 1.5)
        return gamma, beta, mean, var

    branches = []
    for ksize in (K1, K2, K3):
        wgt, bias = conv_init(ksize)
        branches.append((wgt, bias, bn_init()))
    return branches


def fold_params(raw, c_in):
    """Fuse the 3 branches + eval-mode BN into one 40-tap / 96-channel conv,
    with output channels permuted so the pool triples become the 3 contiguous
    32-channel groups.  The BN scale is folded into the weights/bias when it
    is strictly positive (guarded); otherwise it is kept separate."""
    w_comb = np.zeros((KMAX, c_in, CO_TOTAL), np.float32)
    biases, scales, shifts, shrinks = [], [], [], set()

    for i, ((wgt, bias, bn), pad) in enumerate(zip(raw, (P1, P2, P3))):
        wgt = np.asarray(wgt)
        ksize = wgt.shape[-1]
        shrinks.add((ksize - 1) - 2 * pad)        # how much this branch shrinks W
        off = PAD - pad                           # tap offset inside x_pad window
        wk = np.transpose(wgt[:, :, 0, :], (2, 1, 0))       # (K, C, 32)
        w_comb[off:off + ksize, :, i * CO_BRANCH:(i + 1) * CO_BRANCH] = wk
        gamma, beta, mean, var = (np.asarray(a) for a in bn)
        s = gamma / np.sqrt(var + BN_EPS)
        biases.append(np.asarray(bias))
        scales.append(s)
        shifts.append(beta - mean * s)

    # All branches must produce the same W_out or the tap fold mis-aligns.
    assert len(shrinks) == 1, f"branch output widths differ: {shrinks}"

    b_cat = np.concatenate(biases)
    s_cat = np.concatenate(scales)
    t_cat = np.concatenate(shifts)

    # new index (g*32 + o)  <-  old concat index (3*o + g)
    nidx = np.arange(CO_TOTAL)
    perm = 3 * (nidx % CO_BRANCH) + nidx // CO_BRANCH
    w_comb = w_comb[:, :, perm]
    b_cat, s_cat, t_cat = b_cat[perm], s_cat[perm], t_cat[perm]

    scale_folded = bool(np.all(s_cat > 0.0))      # guard: relu(s*z)==s*relu(z)
    if scale_folded:
        w_comb = w_comb * s_cat[None, None, :]
        b_cat = b_cat * s_cat
    return dict(w_comb=w_comb, bias=b_cat, scale=s_cat, shift=t_cat,
                scale_folded=scale_folded)


def build_operands(fp, c_in, w_in):
    """Expand the folded 40-tap conv into the single lane-dense matmul operand
    used by the kernel: the sliding window over W is unrolled into the
    (resident, bf16) weight matrix so the kernel needs no per-tap loop and no
    in-kernel im2col/relayout.  Contraction row index = c*W_pad + w_abs
    (channel-major, matching the NHCW activation relayout).  Column layout:
    pool group g padded to GP lanes; within a group,
    column = out_channel*W_out + output position."""
    assert w_in >= K3, w_in
    w_comb = fp["w_comb"]
    w_out = w_in - (K3 - 1)
    wp = w_in + 2 * PAD
    grp = CO_BRANCH * w_out
    gp = _round_up(grp, LANE)

    big = np.zeros((c_in * wp, 3 * gp), np.float32)
    for g in range(3):
        blk = w_comb[:, :, g * CO_BRANCH:(g + 1) * CO_BRANCH]  # (KMAX, C, 32)
        for w in range(w_out):
            cols = g * gp + np.arange(CO_BRANCH) * w_out + w
            for ci in range(c_in):
                # taps kk=0..KMAX-1 hit padded positions w+kk of channel ci
                big[ci * wp + w: ci * wp + w + KMAX, cols] = blk[:, ci, :]

    if fp["scale_folded"]:
        per_ch = [fp["bias"], fp["shift"]]                    # 2 rows
    else:
        per_ch = [fp["bias"], fp["scale"], fp["shift"]]       # guarded fallback
    pp = np.zeros((len(per_ch), 3 * gp), np.float32)
    for r, v in enumerate(per_ch):
        for g in range(3):
            pp[r, g * gp:g * gp + grp] = np.repeat(
                v[g * CO_BRANCH:(g + 1) * CO_BRANCH], w_out)

    return jnp.asarray(big, dtype=jnp.bfloat16), jnp.asarray(pp, jnp.float32)


def reference(x, raw):
    """Pure-JAX reference of the PyTorch forward (eval-mode BN), f32."""
    outs = []
    for (wgt, bias, bn), pad in zip(raw, (P1, P2, P3)):
        y = lax.conv_general_dilated(
            x, wgt, window_strides=(1, 1),
            padding=((0, 0), (pad, pad)),
            dimension_numbers=('NCHW', 'OIHW', 'NCHW'))
        y = y + bias[None, :, None, None]
        y = jnp.maximum(y, 0.0)
        gamma, beta, mean, var = bn
        y = ((y - mean[None, :, None, None])
             / jnp.sqrt(var + BN_EPS)[None, :, None, None]
             * gamma[None, :, None, None] + beta[None, :, None, None])
        outs.append(y)
    cat = jnp.concatenate(outs, axis=1)                       # (N, 96, H, W_out)
    n, _, h, wo = cat.shape
    # MaxPool3d((3,1,1)) on the 4D concat: max over consecutive channel triples.
    return cat.reshape(n, CO_BRANCH, 3, h, wo).max(axis=2)


if __name__ == "__main__":
    key = jax.random.PRNGKey(0)
    N, C, H, W = 2, 4, 16, 32
    kx, kp = jax.random.split(key)
    x = jax.random.normal(kx, (N, C, H, W), jnp.float32)

    raw = init_params(kp, C)
    fp = fold_params(raw, C)
    w_big, p_pack = build_operands(fp, C, W)

    # tm=16 keeps a multi-step grid at this tiny test size (M = N*H = 32);
    # production sizes should rely on the default (tm<=256, v7x-safe) or push
    # tm to 512-1024 on v5e/v6e's 128 MiB VMEM.
    out = inception_block(x, w_big, p_pack, tm=16)
    out = jax.block_until_ready(out)

    assert out.shape == (N, 32, H, W - 9), out.shape
    ref = reference(x, raw)
    # bf16 matmul operands with f32 accumulation -> loosened tolerance.
    np.testing.assert_allclose(np.asarray(out), np.asarray(ref),
                               rtol=2e-2, atol=2e-2)
    print("KERNEL_OK")
</pallas_src>

<mosaic_0001>
module attributes {stable_mosaic.version = 11 : i64} {
  func.func @kernel(%arg0: i32, %arg1: memref<16x248xbf16, #tpu.memory_space<vmem>>, %arg2: memref<248x2304xbf16, #tpu.memory_space<vmem>>, %arg3: memref<2x2304xf32, #tpu.memory_space<vmem>>, %arg4: memref<16x768xf32, #tpu.memory_space<vmem>>) attributes {dimension_semantics = [#tpu.dimension_semantics<parallel>], iteration_bounds = array<i64: 2>, scalar_prefetch = 0 : i64, scratch_operands = 0 : i64, tpu.core_type = #tpu.core_type<tc>, window_params = [{transform_indices = @transform_0, window_bounds = array<i64: 16, 248>}, {pipeline_mode = #tpu.pipeline_mode<synchronous>, transform_indices = @transform_1, window_bounds = array<i64: 248, 2304>}, {pipeline_mode = #tpu.pipeline_mode<synchronous>, transform_indices = @transform_2, window_bounds = array<i64: 2, 2304>}, {transform_indices = @transform_3, window_bounds = array<i64: 16, 768>}]} {
    %c0 = arith.constant 0 : index
    %c0_0 = arith.constant 0 : index
    %0 = vector.load %arg1[%c0, %c0_0] : memref<16x248xbf16, #tpu.memory_space<vmem>>, vector<16x248xbf16>
    %c0_1 = arith.constant 0 : index
    %c0_2 = arith.constant 0 : index
    %1 = vector.load %arg2[%c0_1, %c0_2] : memref<248x2304xbf16, #tpu.memory_space<vmem>>, vector<248x2304xbf16>
    %cst = arith.constant dense<0.000000e+00> : vector<16x2304xf32>
    %2 = tpu.matmul %0, %1, %cst {dimension_numbers = #tpu.dot_dimension_numbers<[1], [0], [0], [1], [0, 0, 1, 1], [], []>} : vector<16x248xbf16>, vector<248x2304xbf16>, vector<16x2304xf32> -> vector<16x2304xf32>
    %c0_3 = arith.constant 0 : index
    %c0_4 = arith.constant 0 : index
    %3 = vector.load %arg3[%c0_3, %c0_4] : memref<2x2304xf32, #tpu.memory_space<vmem>>, vector<1x2304xf32>
    %4 = vector.broadcast %3 : vector<1x2304xf32> to vector<16x2304xf32>
    %5 = arith.addf %2, %4 : vector<16x2304xf32>
    %cst_5 = arith.constant 0.000000e+00 : f32
    %6 = vector.broadcast %cst_5 : f32 to vector<16x2304xf32>
    %7 = arith.maximumf %5, %6 : vector<16x2304xf32>
    %c1 = arith.constant 1 : index
    %c0_6 = arith.constant 0 : index
    %8 = vector.load %arg3[%c1, %c0_6] : memref<2x2304xf32, #tpu.memory_space<vmem>>, vector<1x2304xf32>
    %9 = vector.broadcast %8 : vector<1x2304xf32> to vector<16x2304xf32>
    %10 = arith.addf %7, %9 : vector<16x2304xf32>
    %11 = vector.extract_strided_slice %10 {offsets = [0, 0], sizes = [16, 768], strides = [1, 1]} : vector<16x2304xf32> to vector<16x768xf32>
    %12 = vector.extract_strided_slice %10 {offsets = [0, 768], sizes = [16, 768], strides = [1, 1]} : vector<16x2304xf32> to vector<16x768xf32>
    %13 = arith.maximumf %11, %12 : vector<16x768xf32>
    %14 = vector.extract_strided_slice %10 {offsets = [0, 1536], sizes = [16, 768], strides = [1, 1]} : vector<16x2304xf32> to vector<16x768xf32>
    %15 = arith.maximumf %13, %14 : vector<16x768xf32>
    %c0_7 = arith.constant 0 : index
    %c0_8 = arith.constant 0 : index
    %16 = vector.load %arg4[%c0_7, %c0_8] : memref<16x768xf32, #tpu.memory_space<vmem>>, vector<16x768xf32>
    tpu.vector_store %arg4[%c0_7, %c0_8], %15 {strides = array<i32>} : memref<16x768xf32, #tpu.memory_space<vmem>>, vector<16x768xf32>,
    return
  }
  func.func @transform_0(%arg0: i32) -> (i32, i32) {
    %c0_i32 = arith.constant 0 : i32
    %c0_i32_0 = arith.constant 0 : i32
    return %arg0, %c0_i32 : i32, i32
  }
  func.func @transform_1(%arg0: i32) -> (i32, i32) {
    %c0_i32 = arith.constant 0 : i32
    %c0_i32_0 = arith.constant 0 : i32
    %c0_i32_1 = arith.constant 0 : i32
    return %c0_i32, %c0_i32_0 : i32, i32
  }
  func.func @transform_2(%arg0: i32) -> (i32, i32) {
    %c0_i32 = arith.constant 0 : i32
    %c0_i32_0 = arith.constant 0 : i32
    %c0_i32_1 = arith.constant 0 : i32
    return %c0_i32, %c0_i32_0 : i32, i32
  }
  func.func @transform_3(%arg0: i32) -> (i32, i32) {
    %c0_i32 = arith.constant 0 : i32
    %c0_i32_0 = arith.constant 0 : i32
    return %arg0, %c0_i32 : i32, i32
  }
}

</mosaic_0001>

<bundles_post_ra>
// kernel: inception_block.1
= control target key start
LH: loop header
LB: loop body
LE: loop exit
PB: predicated region body
PF: predicated region fallthrough
CT: control target
= control target key end

     0   :  { %8 = vsyncpa [#allocation3], 0  ;;  %s3904_s0 = inlined_call_operand.vmem [shape: bf16[32,248], index: 0, kind: input, shape index: {}]   ;;  %s3905_s1 = inlined_call_operand.hbm [shape: bf16[248,2304], index: 1, kind: input, shape index: {}]   ;;  %s3906_s2 = inlined_call_operand.hbm [shape: f32[2,2304], index: 2, kind: input, shape index: {}]   ;;  %s3907_s3 = inlined_call_operand.vmem [shape: f32[32,768], index: 3, kind: output, shape index: {}]  }
   0x1   :  { %9 = vsyncpa [#allocation5], 0  ;;  %s3600_s12 = smov 0  }
   0x2 LB: > { %s2723_s13 = sadd.s32 4294967295, %s3574_s12   ;;  %p2725_p0 = scmp.ge.s32.totalorder %s3574_s12, 1  ;;  %s3574_s12 = sphi %s3600_s12, %s15_s12  }
   0x3   : > { %p114_p1 = scmp.lt.s32.totalorder %s3574_s12, 3  ;;  %s3576_s14 = smov [#allocation2]  }
   0x4   : > { %s126_s15 = sshll.u32 %s3576_s14, 4  ;;  %p3614_p3 = scmp.eq.s32.totalorder %s2723_s13, 0  ;;  %s127_s15 = int_to_ptr.vmem [resolvable:$true] %s126_s15 }
   0x5   : > { %p3608_p2 = pnand %p2725_p0, %p114_p1  ;;  %s3577_s18 = smov [#allocation4]  }
   0x6   : > { %s140_s19 = sshll.u32 %s3577_s18, 4  ;;  %s3519_s21 = scalar_lea.vmem %s127_s15, 35712  ;;  %s141_s19 = int_to_ptr.vmem [resolvable:$true] %s140_s19 }
   0x7   : > { %p3057_p4 = pneg %p3608_p2  ;;  %p3520_p7 = scmp.ne.s32.totalorder %s127_s15, %s3519_s21 }
   0x8   : > { %p3527_p10 = scmp.lt.s32.totalorder %s127_s15, %s127_s15  ;;  %p3528_p11 = scmp.lt.s32.totalorder %s3519_s21, %s3519_s21 }
   0x9   : > { %p3622_p5 = pnand %p3614_p3, %p3057_p4 }
   0xa   : > { %p3529_p12 = por %p3528_p11, %p3527_p10 }
   0xb   : > { %p3510_p6 = pneg %p3622_p5 }
   0xd   : > { %p3522_p8 = pnand %p3520_p7, %p3510_p6 }
   0xf   : > { %p3523_p9 = pneg %p3522_p8 }
  0x11   : > { %p3530_p13 = pnand %p3529_p12, %p3523_p9 }
  0x13   : > { %3533 = shalt.err (!%p3530_p13)
}
  0x14   : > { %s3578_s22 = smov 1152   ;;  %s3579_s23 = smov 72  }
  0x15   : > { %3060 = dma.hbm_to_vmem [thread:$0]  (!%p3622_p5), %s3905_s1, 35712, %s127_s15, [#allocation3], %s3578_s22, %s3578_s22, %s3579_s23  }
  0x16   : > { %s3545_s26 = scalar_lea.vmem %s141_s19, 576  ;;  %p3553_p7 = scmp.lt.s32.totalorder %s141_s19, %s141_s19 }
  0x17   : > { %p3546_p0 = scmp.ne.s32.totalorder %s141_s19, %s3545_s26  ;;  %p3554_p8 = scmp.lt.s32.totalorder %s3545_s26, %s3545_s26 }
  0x19   : > { %p3548_p1 = pnand %p3546_p0, %p3510_p6  ;;  %p3555_p10 = por %p3554_p8, %p3553_p7 }
  0x1b   : > { %p3549_p4 = pneg %p3548_p1 }
  0x1d   : > { %p3556_p9 = pnand %p3555_p10, %p3549_p4 }
  0x1f   : > { %3559 = shalt.err (!%p3556_p9)
}
  0x20   : > { %3063 = dma.hbm_to_vmem [thread:$0]  (!%p3622_p5), %s3906_s2, 576, %s141_s19, [#allocation5]  }
  0x21   : > { %163 = sbr.rel (%p3608_p2) target bundleno = 570 (0x23a), region = 32 }
  0x26   : > { %3565 = dma.done.wait (%p3614_p3), [#allocation3], 35712  }
  0x27   : > { %3567 = vsyncadd (%p3614_p3), [#allocation3], 4294931584 }
  0x28   : > { %3569 = dma.done.wait (%p3614_p3), [#allocation5], 576  }
  0x29   : > { %3571 = vsyncadd (%p3614_p3), [#allocation5], 4294966720  ;;  %v3080_v0 = vld [vmem:[#allocation2 + $0x3f4] ss:$72 sps:$4 sm:$0xff]   ;;  %v3084_v2 = vld [vmem:[#allocation2 + $0x3f0] ss:$72 sps:$4 sm:$0xff]  }
  0x2a   : > { %v3082_v1 = vld [vmem:[#allocation2 + $0x3fc] ss:$72 sps:$4 sm:$0xff]   ;;  %2049 = vmatprep.subr.bf16.mxu0 %v3080_v0  ;;  %v3085_v3 = vld [vmem:[#allocation2 + $0x3f8] ss:$72 sps:$4 sm:$0xff]   ;;  %v3088_v5 = vld [vmem:[#allocation2 + $0x36c] ss:$72 sps:$4 sm:$0xff]  }
  0x2b   : > { %2092 = vmatprep.subr.bf16.mxu1 %v3082_v1  ;;  %v3086_v4 = vld [vmem:[#allocation2 + $0x364] ss:$72 sps:$4 sm:$0xff]   ;;  %2050 = vmatpush1.bf16.msra.mxu0 %v3084_v2  ;;  %v3090_v6 = vld [vmem:[#allocation2 + $0x360] ss:$72 sps:$4 sm:$0xff]   ;;  %v3092_v8 = vld [vmem:[#allocation2 + $0x2d4] ss:$72 sps:$4 sm:$0xff]  }
  0x2c   : > { %2093 = vmatpush1.bf16.msra.mxu1 %v3085_v3  ;;  %2051 = vmatprep.subr.bf16.mxu0 %v3086_v4  ;;  %v3091_v7 = vld [vmem:[#allocation2 + $0x368] ss:$72 sps:$4 sm:$0xff]   ;;  %v3094_v9 = vld [vmem:[#allocation2 + $0x2dc] ss:$72 sps:$4 sm:$0xff]   ;;  %v3097_v11 = vld [vmem:[#allocation2 + $0x2d8] ss:$72 sps:$4 sm:$0xff]  }
  0x2d   : > { %2094 = vmatprep.subr.bf16.mxu1 %v3088_v5  ;;  %v3096_v10 = vld [vmem:[#allocation2 + $0x2d0] ss:$72 sps:$4 sm:$0xff]   ;;  %v3098_v12 = vld [vmem:[#allocation2 + $0x244] ss:$72 sps:$4 sm:$0xff]   ;;  %v3102_v14 = vld [vmem:[#allocation2 + $0x240] ss:$72 sps:$4 sm:$0xff]  }
  0x2e   : > { %v3100_v13 = vld [vmem:[#allocation2 + $0x24c] ss:$72 sps:$4 sm:$0xff]   ;;  %v3103_v15 = vld [vmem:[#allocation2 + $0x248] ss:$72 sps:$4 sm:$0xff]   ;;  %v3106_v17 = vld [vmem:[#allocation2 + $0x1bc] ss:$72 sps:$4 sm:$0xff]  }
  0x2f   : > { %2052 = vmatpush1.bf16.msra.mxu0 %v3090_v6  ;;  %v3104_v16 = vld [vmem:[#allocation2 + $0x1b4] ss:$72 sps:$4 sm:$0xff]   ;;  %v3108_v18 = vld [vmem:[#allocation2 + $0x1b0] ss:$72 sps:$4 sm:$0xff]   ;;  %v3110_v20 = vld [vmem:[#allocation2 + $0x124] ss:$72 sps:$4 sm:$0xff]  }
  0x30   : > { %2095 = vmatpush1.bf16.msra.mxu1 %v3091_v7  ;;  %2053 = vmatprep.subr.bf16.mxu0 %v3092_v8  ;;  %v3109_v19 = vld [vmem:[#allocation2 + $0x1b8] ss:$72 sps:$4 sm:$0xff]   ;;  %v3112_v21 = vld [vmem:[#allocation2 + $0x12c] ss:$72 sps:$4 sm:$0xff]   ;;  %v3115_v23 = vld [vmem:[#allocation2 + $0x128] ss:$72 sps:$4 sm:$0xff]  }
  0x31   : > { %2096 = vmatprep.subr.bf16.mxu1 %v3094_v9  ;;  %v3114_v22 = vld [vmem:[#allocation2 + $0x120] ss:$72 sps:$4 sm:$0xff]   ;;  %v3116_v24 = vld [vmem:[#allocation2 + $0x94] ss:$72 sps:$4 sm:$0xff]   ;;  %v3120_v26 = vld [vmem:[#allocation2 + $0x90] ss:$72 sps:$4 sm:$0xff]  }
  0x32   : > { %v3118_v25 = vld [vmem:[#allocation2 + $0x9c] ss:$72 sps:$4 sm:$0xff]   ;;  %s2732_s29 = sshll.u32 %s2723_s13, 1  ;;  %v3121_v27 = vld [vmem:[#allocation2 + $0x98] ss:$72 sps:$4 sm:$0xff]   ;;  %v479_v30 = vld [vmem:[#allocation2 + $0x870] sm:$0xff] }
  0x33   : > { %2054 = vmatpush1.bf16.msra.mxu0 %v3096_v10  ;;  %v3122_v28 = vld [vmem:[#allocation2 + $0x4] ss:$72 sps:$4 sm:$0xff]   ;;  %v480_v31 = vld [vmem:[#allocation2 + $0x878] sm:$0xff]  ;;  %v3126_v32 = vld [vmem:[#allocation2] ss:$72 sps:$4 sm:$0xff]   ;;  %p194_p2 = scmp.lt.s32.totalorder %s2732_s29, 3  ;;  %v3010_v34 = vcombine.high %v479_v30, %v479_v30  ;;  %v3009_v36 = vcombine.low %v479_v30, %v479_v30 }
  0x34   : > { %2097 = vmatpush1.bf16.msra.mxu1 %v3097_v11  ;;  %2055 = vmatprep.subr.bf16.mxu0 %v3098_v12  ;;  %v3124_v29 = vld [vmem:[#allocation2 + $0xc] ss:$72 sps:$4 sm:$0xff]   ;;  %v3127_v33 = vld [vmem:[#allocation2 + $0x8] ss:$72 sps:$4 sm:$0xff]   ;;  %v3012_v35 = vcombine.high %v480_v31, %v480_v31  ;;  %v3011_v37 = vcombine.low %v480_v31, %v480_v31  ;;  %vm1994_vm0 = vcmask 1043456   ;;  %vm1990_vm1 = vcmask 982016  }
  0x35   : > { %2098 = vmatprep.subr.bf16.mxu1 %v3100_v13  ;;  %s3912_s29 = smov (!%p194_p2, %s2732_s29), 3  ;;  %v3132_v38 = vld [vmem:[#allocation2 + $0x7e4] ss:$72 sps:$4 sm:$0xff]   ;;  %v1996_v39 = vsel %vm1994_vm0, %v3009_v36, 0  ;;  %v3136_v42 = vld [vmem:[#allocation2 + $0x7e0] ss:$72 sps:$4 sm:$0xff]  }
  0x36   : > { %v2002_v40 = vsel %vm1994_vm0, %v3011_v37, 0  ;;  %v3134_v41 = vld [vmem:[#allocation2 + $0x7ec] ss:$72 sps:$4 sm:$0xff]   ;;  %s3047_s30 = sshll.u32 %s3912_s29, 3  ;;  %v3137_v43 = vld [vmem:[#allocation2 + $0x7e8] ss:$72 sps:$4 sm:$0xff]  }
  0x37   : > { %2056 = vmatpush1.bf16.msra.mxu0 %v3102_v14  ;;  %v3138_v44 = vld [vmem:[#allocation2 + $0x754] ss:$72 sps:$4 sm:$0xff]   ;;  %s3666_s6 = scalar_lea.vmem %s3904_s0, %s3047_s30  ;;  %v3142_v46 = vld [vmem:[#allocation2 + $0x750] ss:$72 sps:$4 sm:$0xff]   ;;  %v3144_v48 = vld [vmem:[#allocation2 + $0x6c4] ss:$72 sps:$4 sm:$0xff]  }
  0x38   : > { %2099 = vmatpush1.bf16.msra.mxu1 %v3103_v15  ;;  %2057 = vmatprep.subr.bf16.mxu0 %v3104_v16  ;;  %v3140_v45 = vld [vmem:[#allocation2 + $0x75c] ss:$72 sps:$4 sm:$0xff]   ;;  %v3143_v47 = vld [vmem:[#allocation2 + $0x758] ss:$72 sps:$4 sm:$0xff]   ;;  %v3146_v49 = vld [vmem:[#allocation2 + $0x6cc] ss:$72 sps:$4 sm:$0xff]  }
  0x39   : > { %2100 = vmatprep.subr.bf16.mxu1 %v3106_v17  ;;  %v3669_v50 = vld [vmem:[%s3666_s6 + $0x4] ss:$8 sps:$4 sm:$0xff]   ;;  %v3148_v51 = vld [vmem:[#allocation2 + $0x6c0] ss:$72 sps:$4 sm:$0xff]   ;;  %v3150_v53 = vld [vmem:[#allocation2 + $0x634] ss:$72 sps:$4 sm:$0xff]  }
  0x3a   : > { %3028 = vmatprep.mubr.msk.bf16.mxu0 %vm1990_vm1, %v3669_v50  ;;  %3030 = vmatprep.mubr.msk.bf16.mxu1 %vm1990_vm1, %v3669_v50  ;;  %v3149_v52 = vld [vmem:[#allocation2 + $0x6c8] ss:$72 sps:$4 sm:$0xff]   ;;  %v3152_v54 = vld [vmem:[#allocation2 + $0x63c] ss:$72 sps:$4 sm:$0xff]   ;;  %v3155_v56 = vld [vmem:[#allocation2 + $0x638] ss:$72 sps:$4 sm:$0xff]  }
  0x3b   : > { %2058 = vmatpush1.bf16.msra.mxu0 %v3108_v18  ;;  %v3154_v55 = vld [vmem:[#allocation2 + $0x630] ss:$72 sps:$4 sm:$0xff]   ;;  %v3156_v57 = vld [vmem:[#allocation2 + $0x5a4] ss:$72 sps:$4 sm:$0xff]   ;;  %v3160_v59 = vld [vmem:[#allocation2 + $0x5a0] ss:$72 sps:$4 sm:$0xff]  }
  0x3c   : > { %2101 = vmatpush1.bf16.msra.mxu1 %v3109_v19  ;;  %2059 = vmatprep.subr.bf16.mxu0 %v3110_v20  ;;  %v3158_v58 = vld [vmem:[#allocation2 + $0x5ac] ss:$72 sps:$4 sm:$0xff]   ;;  %v3161_v60 = vld [vmem:[#allocation2 + $0x5a8] ss:$72 sps:$4 sm:$0xff]   ;;  %v3164_v62 = vld [vmem:[#allocation2 + $0x51c] ss:$72 sps:$4 sm:$0xff]  }
  0x3d   : > { %2102 = vmatprep.subr.bf16.mxu1 %v3112_v21  ;;  %v3162_v61 = vld [vmem:[#allocation2 + $0x514] ss:$72 sps:$4 sm:$0xff]   ;;  %v3166_v63 = vld [vmem:[#allocation2 + $0x510] ss:$72 sps:$4 sm:$0xff]   ;;  %v3168_v1 = vld [vmem:[#allocation2 + $0x484] ss:$72 sps:$4 sm:$0xff]  }
  0x3e   : > { %v3167_v0 = vld [vmem:[#allocation2 + $0x518] ss:$72 sps:$4 sm:$0xff]   ;;  %v3170_v2 = vld [vmem:[#allocation2 + $0x48c] ss:$72 sps:$4 sm:$0xff]   ;;  %v3173_v4 = vld [vmem:[#allocation2 + $0x488] ss:$72 sps:$4 sm:$0xff]  }
  0x3f   : > { %2060 = vmatpush1.bf16.msra.mxu0 %v3114_v22  ;;  %v3172_v3 = vld [vmem:[#allocation2 + $0x480] ss:$72 sps:$4 sm:$0xff]   ;;  %v3179_v5 = vld [vmem:[#allocation2 + $0x404] ss:$72 sps:$4 sm:$0xff]   ;;  %v3185_v10 = vld [vmem:[#allocation2 + $0x374] ss:$72 sps:$4 sm:$0xff]  }
  0x40   : > { %2103 = vmatpush1.bf16.msra.mxu1 %v3115_v23  ;;  %2061 = vmatprep.subr.bf16.mxu0 %v3116_v24  ;;  %v3182_v6 = vld [vmem:[#allocation2 + $0x40c] ss:$72 sps:$4 sm:$0xff]   ;;  %v3676_v7 = vld [vmem:[%s3666_s6] ss:$8 sps:$4 sm:$0xff]   ;;  %v3188_v11 = vld [vmem:[#allocation2 + $0x37c] ss:$72 sps:$4 sm:$0xff]  }
  0x41   : > { %2104 = vmatprep.subr.bf16.mxu1 %v3118_v25  ;;  %v3177_v8 = vld [vmem:[#allocation2 + $0x400] ss:$72 sps:$4 sm:$0xff]   ;;  %v3183_v12 = vld [vmem:[#allocation2 + $0x370] ss:$72 sps:$4 sm:$0xff]   ;;  %v3191_v14 = vld [vmem:[#allocation2 + $0x2e4] ss:$72 sps:$4 sm:$0xff]  }
  0x42   : > { %v3180_v9 = vld [vmem:[#allocation2 + $0x408] ss:$72 sps:$4 sm:$0xff]   ;;  %v3186_v13 = vld [vmem:[#allocation2 + $0x378] ss:$72 sps:$4 sm:$0xff]   ;;  %v3194_v15 = vld [vmem:[#allocation2 + $0x2ec] ss:$72 sps:$4 sm:$0xff]  }
  0x43   : > { %2062 = vmatpush1.bf16.msra.mxu0 %v3120_v26  ;;  %v3189_v16 = vld [vmem:[#allocation2 + $0x2e0] ss:$72 sps:$4 sm:$0xff]   ;;  %v3197_v18 = vld [vmem:[#allocation2 + $0x254] ss:$72 sps:$4 sm:$0xff]   ;;  %v3195_v20 = vld [vmem:[#allocation2 + $0x250] ss:$72 sps:$4 sm:$0xff]  }
  0x44   : > { %2105 = vmatpush1.bf16.msra.mxu1 %v3121_v27  ;;  %2063 = vmatprep.subr.bf16.mxu0 %v3122_v28  ;;  %v3192_v17 = vld [vmem:[#allocation2 + $0x2e8] ss:$72 sps:$4 sm:$0xff]   ;;  %v3200_v19 = vld [vmem:[#allocation2 + $0x25c] ss:$72 sps:$4 sm:$0xff]   ;;  %v3198_v21 = vld [vmem:[#allocation2 + $0x258] ss:$72 sps:$4 sm:$0xff]  }
  0x45   : > { %2106 = vmatprep.subr.bf16.mxu1 %v3124_v29  ;;  %v3203_v22 = vld [vmem:[#allocation2 + $0x1c4] ss:$72 sps:$4 sm:$0xff]   ;;  %v3201_v24 = vld [vmem:[#allocation2 + $0x1c0] ss:$72 sps:$4 sm:$0xff]   ;;  %v3209_v26 = vld [vmem:[#allocation2 + $0x134] ss:$72 sps:$4 sm:$0xff]  }
  0x46   : > { %v3206_v23 = vld [vmem:[#allocation2 + $0x1cc] ss:$72 sps:$4 sm:$0xff]   ;;  %v3204_v25 = vld [vmem:[#allocation2 + $0x1c8] ss:$72 sps:$4 sm:$0xff]   ;;  %v3212_v27 = vld [vmem:[#allocation2 + $0x13c] ss:$72 sps:$4 sm:$0xff]  }
  0x47   : > { %2064 = vmatpush1.bf16.msra.mxu0 %v3126_v32  ;;  %v3207_v28 = vld [vmem:[#allocation2 + $0x130] ss:$72 sps:$4 sm:$0xff]   ;;  %v3215_v30 = vld [vmem:[#allocation2 + $0xa4] ss:$72 sps:$4 sm:$0xff]   ;;  %v3213_v32 = vld [vmem:[#allocation2 + $0xa0] ss:$72 sps:$4 sm:$0xff]  }
  0x48   : > { %2107 = vmatpush1.bf16.msra.mxu1 %v3127_v33  ;;  %3027 = vmatprep.subr.msk.bf16.mxu0 %vm1994_vm0, %v3010_v34  ;;  %v3210_v29 = vld [vmem:[#allocation2 + $0x138] ss:$72 sps:$4 sm:$0xff]   ;;  %v3218_v31 = vld [vmem:[#allocation2 + $0xac] ss:$72 sps:$4 sm:$0xff]   ;;  %v3216_v33 = vld [vmem:[#allocation2 + $0xa8] ss:$72 sps:$4 sm:$0xff]  }
  0x49   : > { %3029 = vmatprep.subr.msk.bf16.mxu1 %vm1994_vm0, %v3012_v35  ;;  %v3221_v34 = vld [vmem:[#allocation2 + $0x14] ss:$72 sps:$4 sm:$0xff]   ;;  %v481_v36 = vld [vmem:[#allocation2 + $0x880] sm:$0xff]  ;;  %v482_v37 = vld [vmem:[#allocation2 + $0x888] sm:$0xff]  ;;  %s3048_s7 = smul.u32 48, %s3912_s29 }
  0x4a   : > { %v3224_v35 = vld [vmem:[#allocation2 + $0x1c] ss:$72 sps:$4 sm:$0xff]  }
  0x4b   : > { %2066 = vmatpush2.bf16.msra.mxu0 %v1996_v39  ;;  %v3222_v39 = vld [vmem:[#allocation2 + $0x18] ss:$72 sps:$4 sm:$0xff]   ;;  %s3867_s10 = scalar_lea.vmem %s3907_s3, %s3048_s7 }
  0x4c   : > { %2109 = vmatpush2.bf16.msra.mxu1 %v2002_v40  ;;  %2067 = vmatprep.subr.bf16.mxu0 %v3132_v38  ;;  %v3219_v38 = vld [vmem:[#allocation2 + $0x10] ss:$72 sps:$4 sm:$0xff]   ;;  %v3014_v40 = vcombine.high %v481_v36, %v481_v36 }
  0x4d   : > { %2110 = vmatprep.subr.bf16.mxu1 %v3134_v41  ;;  %v3016_v41 = vcombine.high %v482_v37, %v482_v37 }
  0x4f   : > { %2068 = vmatpush2.bf16.msra.mxu0 %v3136_v42  ;;  %v3013_v42 = vcombine.low %v481_v36, %v481_v36  ;;  %v3312_v36 = vld [vmem:[#allocation2 + $0xbc] ss:$72 sps:$4 sm:$0xff]  }
  0x50   : > { %2111 = vmatpush2.bf16.msra.mxu1 %v3137_v43  ;;  %2069 = vmatprep.subr.bf16.mxu0 %v3138_v44  ;;  %v3015_v43 = vcombine.low %v482_v37, %v482_v37  ;;  %v3231_v44 = vld [vmem:[#allocation2 + $0x7f4] ss:$72 sps:$4 sm:$0xff]   ;;  %v3307_v37 = vld [vmem:[#allocation2 + $0xb0] ss:$72 sps:$4 sm:$0xff]  }
  0x51   : > { %2112 = vmatprep.subr.bf16.mxu1 %v3140_v45  ;;  %v2008_v45 = vsel %vm1994_vm0, %v3013_v42, 0  ;;  %v484_v42 = vld [vmem:[#allocation2 + $0x898] sm:$0xff] }
  0x53   : > { %2070 = vmatpush2.bf16.msra.mxu0 %v3142_v46  ;;  %v2014_v46 = vsel %vm1994_vm0, %v3015_v43, 0  ;;  %v3313_v43 = vld [vmem:[#allocation2 + $0x20] ss:$72 sps:$4 sm:$0xff]  }
  0x54   : > { %2113 = vmatpush2.bf16.msra.mxu1 %v3143_v47  ;;  %2071 = vmatprep.subr.bf16.mxu0 %v3144_v48  ;;  %v3234_v47 = vld [vmem:[#allocation2 + $0x7fc] ss:$72 sps:$4 sm:$0xff]   ;;  %v3229_v48 = vld [vmem:[#allocation2 + $0x7f0] ss:$72 sps:$4 sm:$0xff]  }
  0x55   : > { %2114 = vmatprep.subr.bf16.mxu1 %v3146_v49  ;;  %v3232_v49 = vld [vmem:[#allocation2 + $0x7f8] ss:$72 sps:$4 sm:$0xff]  }
  0x57   : > { %2072 = vmatpush2.bf16.msra.mxu0 %v3148_v51  ;;  %v3237_v51 = vld [vmem:[#allocation2 + $0x764] ss:$72 sps:$4 sm:$0xff]  }
  0x58   : > { %2115 = vmatpush2.bf16.msra.mxu1 %v3149_v52  ;;  %2073 = vmatprep.subr.bf16.mxu0 %v3150_v53  ;;  %v3240_v52 = vld [vmem:[#allocation2 + $0x76c] ss:$72 sps:$4 sm:$0xff]   ;;  %v3235_v53 = vld [vmem:[#allocation2 + $0x760] ss:$72 sps:$4 sm:$0xff]  }
  0x59   : > { %2116 = vmatprep.subr.bf16.mxu1 %v3152_v54  ;;  %v3238_v54 = vld [vmem:[#allocation2 + $0x768] ss:$72 sps:$4 sm:$0xff]  }
  0x5b   : > { %2074 = vmatpush2.bf16.msra.mxu0 %v3154_v55  ;;  %v3243_v55 = vld [vmem:[#allocation2 + $0x6d4] ss:$72 sps:$4 sm:$0xff]  }
  0x5c   : > { %2117 = vmatpush2.bf16.msra.mxu1 %v3155_v56  ;;  %2075 = vmatprep.subr.bf16.mxu0 %v3156_v57  ;;  %v3246_v56 = vld [vmem:[#allocation2 + $0x6dc] ss:$72 sps:$4 sm:$0xff]   ;;  %v3241_v57 = vld [vmem:[#allocation2 + $0x6d0] ss:$72 sps:$4 sm:$0xff]  }
  0x5d   : > { %2118 = vmatprep.subr.bf16.mxu1 %v3158_v58  ;;  %v3244_v58 = vld [vmem:[#allocation2 + $0x6d8] ss:$72 sps:$4 sm:$0xff]  }
  0x5f   : > { %2076 = vmatpush2.bf16.msra.mxu0 %v3160_v59  ;;  %v3249_v59 = vld [vmem:[#allocation2 + $0x644] ss:$72 sps:$4 sm:$0xff]  }
  0x60   : > { %2119 = vmatpush2.bf16.msra.mxu1 %v3161_v60  ;;  %2077 = vmatprep.subr.bf16.mxu0 %v3162_v61  ;;  %v3252_v60 = vld [vmem:[#allocation2 + $0x64c] ss:$72 sps:$4 sm:$0xff]   ;;  %v3247_v61 = vld [vmem:[#allocation2 + $0x640] ss:$72 sps:$4 sm:$0xff]  }
  0x61   : > { %2120 = vmatprep.subr.bf16.mxu1 %v3164_v62  ;;  %v3250_v62 = vld [vmem:[#allocation2 + $0x648] ss:$72 sps:$4 sm:$0xff]  }
  0x63   : > { %2078 = vmatpush2.bf16.msra.mxu0 %v3166_v63  ;;  %v3255_v63 = vld [vmem:[#allocation2 + $0x5b4] ss:$72 sps:$4 sm:$0xff]  }
  0x64   : > { %2121 = vmatpush2.bf16.msra.mxu1 %v3167_v0  ;;  %2079 = vmatprep.subr.bf16.mxu0 %v3168_v1  ;;  %v3258_v0 = vld [vmem:[#allocation2 + $0x5bc] ss:$72 sps:$4 sm:$0xff]   ;;  %v3253_v1 = vld [vmem:[#allocation2 + $0x5b0] ss:$72 sps:$4 sm:$0xff]  }
  0x65   : > { %2122 = vmatprep.subr.bf16.mxu1 %v3170_v2  ;;  %v3256_v2 = vld [vmem:[#allocation2 + $0x5b8] ss:$72 sps:$4 sm:$0xff]  }
  0x67   : > { %2080 = vmatpush2.bf16.msra.mxu0 %v3172_v3  ;;  %v3261_v3 = vld [vmem:[#allocation2 + $0x524] ss:$72 sps:$4 sm:$0xff]  }
  0x68   : > { %2123 = vmatpush2.bf16.msra.mxu1 %v3173_v4  ;;  %2135 = vmatprep.subr.bf16.mxu0 %v3179_v5  ;;  %v3264_v4 = vld [vmem:[#allocation2 + $0x52c] ss:$72 sps:$4 sm:$0xff]   ;;  %v3259_v5 = vld [vmem:[#allocation2 + $0x520] ss:$72 sps:$4 sm:$0xff]  }
  0x69   : > { %2178 = vmatprep.subr.bf16.mxu1 %v3182_v6  ;;  %v3262_v6 = vld [vmem:[#allocation2 + $0x528] ss:$72 sps:$4 sm:$0xff]  }
  0x6a   : > { %2082 = vmatmul.mubr.bf16.vlgmr.msra.gmra.mxu0 %v3676_v7 }
  0x6b   : > { %2125 = vmatmul.mubr.bf16.vlgmr.msra.gmra.mxu1 %v3676_v7  ;;  %2136 = vmatpush1.bf16.msra.mxu0 %v3177_v8  ;;  %v3267_v8 = vld [vmem:[#allocation2 + $0x494] ss:$72 sps:$4 sm:$0xff]  }
  0x6c   : > { %2179 = vmatpush1.bf16.msra.mxu1 %v3180_v9  ;;  %2137 = vmatprep.subr.bf16.mxu0 %v3185_v10  ;;  %v3270_v9 = vld [vmem:[#allocation2 + $0x49c] ss:$72 sps:$4 sm:$0xff]   ;;  %v3265_v10 = vld [vmem:[#allocation2 + $0x490] ss:$72 sps:$4 sm:$0xff]  }
  0x6d   : > { %2180 = vmatprep.subr.bf16.mxu1 %v3188_v11  ;;  %3032 = vmatprep.mubr.msk.bf16.mxu0 %vm1990_vm1, %v3669_v50  ;;  %v3268_v11 = vld [vmem:[#allocation2 + $0x498] ss:$72 sps:$4 sm:$0xff]  }
  0x6e   : > { %3034 = vmatprep.mubr.msk.bf16.mxu1 %vm1990_vm1, %v3669_v50 }
  0x6f   : > { %2138 = vmatpush1.bf16.msra.mxu0 %v3183_v12  ;;  %v3273_v12 = vld [vmem:[#allocation2 + $0x414] ss:$72 sps:$4 sm:$0xff]  }
  0x70   : > { %2181 = vmatpush1.bf16.msra.mxu1 %v3186_v13  ;;  %2139 = vmatprep.subr.bf16.mxu0 %v3191_v14  ;;  %v3276_v13 = vld [vmem:[#allocation2 + $0x41c] ss:$72 sps:$4 sm:$0xff]   ;;  %v3271_v14 = vld [vmem:[#allocation2 + $0x410] ss:$72 sps:$4 sm:$0xff]  }
  0x71   : > { %2182 = vmatprep.subr.bf16.mxu1 %v3194_v15  ;;  %v3274_v15 = vld [vmem:[#allocation2 + $0x418] ss:$72 sps:$4 sm:$0xff]  }
  0x73   : > { %2140 = vmatpush1.bf16.msra.mxu0 %v3189_v16  ;;  %v3279_v16 = vld [vmem:[#allocation2 + $0x384] ss:$72 sps:$4 sm:$0xff]  }
  0x74   : > { %2183 = vmatpush1.bf16.msra.mxu1 %v3192_v17  ;;  %2141 = vmatprep.subr.bf16.mxu0 %v3197_v18  ;;  %v3282_v17 = vld [vmem:[#allocation2 + $0x38c] ss:$72 sps:$4 sm:$0xff]   ;;  %v3277_v18 = vld [vmem:[#allocation2 + $0x380] ss:$72 sps:$4 sm:$0xff]  }
  0x75   : > { %2184 = vmatprep.subr.bf16.mxu1 %v3200_v19  ;;  %v3280_v19 = vld [vmem:[#allocation2 + $0x388] ss:$72 sps:$4 sm:$0xff]  }
  0x77   : > { %2142 = vmatpush1.bf16.msra.mxu0 %v3195_v20  ;;  %v3285_v20 = vld [vmem:[#allocation2 + $0x2f4] ss:$72 sps:$4 sm:$0xff]  }
  0x78   : > { %2185 = vmatpush1.bf16.msra.mxu1 %v3198_v21  ;;  %2143 = vmatprep.subr.bf16.mxu0 %v3203_v22  ;;  %v3288_v21 = vld [vmem:[#allocation2 + $0x2fc] ss:$72 sps:$4 sm:$0xff]   ;;  %v3283_v22 = vld [vmem:[#allocation2 + $0x2f0] ss:$72 sps:$4 sm:$0xff]  }
  0x79   : > { %2186 = vmatprep.subr.bf16.mxu1 %v3206_v23  ;;  %v3286_v23 = vld [vmem:[#allocation2 + $0x2f8] ss:$72 sps:$4 sm:$0xff]  }
  0x7b   : > { %2144 = vmatpush1.bf16.msra.mxu0 %v3201_v24  ;;  %v3291_v24 = vld [vmem:[#allocation2 + $0x264] ss:$72 sps:$4 sm:$0xff]  }
  0x7c   : > { %2187 = vmatpush1.bf16.msra.mxu1 %v3204_v25  ;;  %2145 = vmatprep.subr.bf16.mxu0 %v3209_v26  ;;  %v3294_v25 = vld [vmem:[#allocation2 + $0x26c] ss:$72 sps:$4 sm:$0xff]   ;;  %v3289_v26 = vld [vmem:[#allocation2 + $0x260] ss:$72 sps:$4 sm:$0xff]  }
  0x7d   : > { %2188 = vmatprep.subr.bf16.mxu1 %v3212_v27  ;;  %v3292_v27 = vld [vmem:[#allocation2 + $0x268] ss:$72 sps:$4 sm:$0xff]  }
  0x7f   : > { %2146 = vmatpush1.bf16.msra.mxu0 %v3207_v28  ;;  %v3297_v28 = vld [vmem:[#allocation2 + $0x1d4] ss:$72 sps:$4 sm:$0xff]  }
  0x80   : > { %2189 = vmatpush1.bf16.msra.mxu1 %v3210_v29  ;;  %2147 = vmatprep.subr.bf16.mxu0 %v3215_v30  ;;  %v3300_v29 = vld [vmem:[#allocation2 + $0x1dc] ss:$72 sps:$4 sm:$0xff]   ;;  %v3295_v30 = vld [vmem:[#allocation2 + $0x1d0] ss:$72 sps:$4 sm:$0xff]  }
  0x81   : > { %2190 = vmatprep.subr.bf16.mxu1 %v3218_v31  ;;  %v3303_v31 = vld [vmem:[#allocation2 + $0x144] ss:$72 sps:$4 sm:$0xff]  }
  0x83   : > { %2148 = vmatpush1.bf16.msra.mxu0 %v3213_v32  ;;  %v3306_v32 = vld [vmem:[#allocation2 + $0x14c] ss:$72 sps:$4 sm:$0xff]  }
  0x84   : > { %2191 = vmatpush1.bf16.msra.mxu1 %v3216_v33  ;;  %2149 = vmatprep.subr.bf16.mxu0 %v3221_v34  ;;  %v3301_v33 = vld [vmem:[#allocation2 + $0x140] ss:$72 sps:$4 sm:$0xff]  }
  0x85   : > { %2192 = vmatprep.subr.bf16.mxu1 %v3224_v35  ;;  %v3304_v34 = vld [vmem:[#allocation2 + $0x148] ss:$72 sps:$4 sm:$0xff]   ;;  %v3309_v35 = vld [vmem:[#allocation2 + $0xb4] ss:$72 sps:$4 sm:$0xff]  }
  0x87   : > { %2150 = vmatpush1.bf16.msra.mxu0 %v3219_v38  ;;  %v3310_v38 = vld [vmem:[#allocation2 + $0xb8] ss:$72 sps:$4 sm:$0xff]  }
  0x88   : > { %2193 = vmatpush1.bf16.msra.mxu1 %v3222_v39  ;;  %3031 = vmatprep.subr.msk.bf16.mxu0 %vm1994_vm0, %v3014_v40  ;;  %v3315_v39 = vld [vmem:[#allocation2 + $0x24] ss:$72 sps:$4 sm:$0xff]  }
  0x89   : > { %3033 = vmatprep.subr.msk.bf16.mxu1 %vm1994_vm0, %v3016_v41  ;;  %v3318_v40 = vld [vmem:[#allocation2 + $0x2c] ss:$72 sps:$4 sm:$0xff]  }
  0x8a   : > { %v483_v41 = vld [vmem:[#allocation2 + $0x890] sm:$0xff] }
  0x8b   : > { %2152 = vmatpush2.bf16.msra.mxu0 %v2008_v45  ;;  %v3018_v45 = vcombine.high %v483_v41, %v483_v41 }
  0x8c   : > { %2195 = vmatpush2.bf16.msra.mxu1 %v2014_v46  ;;  %2153 = vmatprep.subr.bf16.mxu0 %v3231_v44  ;;  %v3316_v44 = vld [vmem:[#allocation2 + $0x28] ss:$72 sps:$4 sm:$0xff]   ;;  %v3020_v46 = vcombine.high %v484_v42, %v484_v42 }
  0x8d   : > { %2196 = vmatprep.subr.bf16.mxu1 %v3234_v47  ;;  %v3017_v47 = vcombine.low %v483_v41, %v483_v41  ;;  %v3406_v41 = vld [vmem:[#allocation2 + $0xcc] ss:$72 sps:$4 sm:$0xff]  }
  0x8f   : > { %2154 = vmatpush2.bf16.msra.mxu0 %v3229_v48  ;;  %v3019_v48 = vcombine.low %v484_v42, %v484_v42  ;;  %v3401_v42 = vld [vmem:[#allocation2 + $0xc0] ss:$72 sps:$4 sm:$0xff]  }
  0x90   : > { %2197 = vmatpush2.bf16.msra.mxu1 %v3232_v49  ;;  %2155 = vmatprep.subr.bf16.mxu0 %v3237_v51  ;;  %v3325_v49 = vld [vmem:[#allocation2 + $0x804] ss:$72 sps:$4 sm:$0xff]   ;;  %v2020_v51 = vsel %vm1994_vm0, %v3017_v47, 0 }
  0x91   : > { %2198 = vmatprep.subr.bf16.mxu1 %v3240_v52  ;;  %v2026_v52 = vsel %vm1994_vm0, %v3019_v48, 0  ;;  %v486_v47 = vld [vmem:[#allocation2 + $0x8a8] sm:$0xff]  ;;  %v3407_v48 = vld [vmem:[#allocation2 + $0x30] ss:$72 sps:$4 sm:$0xff]  }
  0x93   : > { %2156 = vmatpush2.bf16.msra.mxu0 %v3235_v53  ;;  %v3328_v53 = vld [vmem:[#allocation2 + $0x80c] ss:$72 sps:$4 sm:$0xff]  }
  0x94   : > { %2199 = vmatpush2.bf16.msra.mxu1 %v3238_v54  ;;  %2157 = vmatprep.subr.bf16.mxu0 %v3243_v55  ;;  %v3323_v54 = vld [vmem:[#allocation2 + $0x800] ss:$72 sps:$4 sm:$0xff]  }
  0x95   : > { %2200 = vmatprep.subr.bf16.mxu1 %v3246_v56  ;;  %v3326_v55 = vld [vmem:[#allocation2 + $0x808] ss:$72 sps:$4 sm:$0xff]   ;;  %v3331_v56 = vld [vmem:[#allocation2 + $0x774] ss:$72 sps:$4 sm:$0xff]  }
  0x97   : > { %2158 = vmatpush2.bf16.msra.mxu0 %v3241_v57  ;;  %v3334_v57 = vld [vmem:[#allocation2 + $0x77c] ss:$72 sps:$4 sm:$0xff]  }
  0x98   : > { %2201 = vmatpush2.bf16.msra.mxu1 %v3244_v58  ;;  %2159 = vmatprep.subr.bf16.mxu0 %v3249_v59  ;;  %v3329_v58 = vld [vmem:[#allocation2 + $0x770] ss:$72 sps:$4 sm:$0xff]  }
  0x99   : > { %2202 = vmatprep.subr.bf16.mxu1 %v3252_v60  ;;  %v3332_v59 = vld [vmem:[#allocation2 + $0x778] ss:$72 sps:$4 sm:$0xff]   ;;  %v3337_v60 = vld [vmem:[#allocation2 + $0x6e4] ss:$72 sps:$4 sm:$0xff]  }
  0x9b   : > { %2160 = vmatpush2.bf16.msra.mxu0 %v3247_v61  ;;  %v3340_v61 = vld [vmem:[#allocation2 + $0x6ec] ss:$72 sps:$4 sm:$0xff]  }
  0x9c   : > { %2203 = vmatpush2.bf16.msra.mxu1 %v3250_v62  ;;  %2161 = vmatprep.subr.bf16.mxu0 %v3255_v63  ;;  %v3335_v62 = vld [vmem:[#allocation2 + $0x6e0] ss:$72 sps:$4 sm:$0xff]  }
  0x9d   : > { %2204 = vmatprep.subr.bf16.mxu1 %v3258_v0  ;;  %v3338_v63 = vld [vmem:[#allocation2 + $0x6e8] ss:$72 sps:$4 sm:$0xff]   ;;  %v3343_v0 = vld [vmem:[#allocation2 + $0x654] ss:$72 sps:$4 sm:$0xff]  }
  0x9f   : > { %2162 = vmatpush2.bf16.msra.mxu0 %v3253_v1  ;;  %v3346_v1 = vld [vmem:[#allocation2 + $0x65c] ss:$72 sps:$4 sm:$0xff]  }
  0xa0   : > { %2205 = vmatpush2.bf16.msra.mxu1 %v3256_v2  ;;  %2163 = vmatprep.subr.bf16.mxu0 %v3261_v3  ;;  %v3341_v2 = vld [vmem:[#allocation2 + $0x650] ss:$72 sps:$4 sm:$0xff]  }
  0xa1   : > { %2206 = vmatprep.subr.bf16.mxu1 %v3264_v4  ;;  %v3344_v3 = vld [vmem:[#allocation2 + $0x658] ss:$72 sps:$4 sm:$0xff]   ;;  %v3349_v4 = vld [vmem:[#allocation2 + $0x5c4] ss:$72 sps:$4 sm:$0xff]  }
  0xa3   : > { %2164 = vmatpush2.bf16.msra.mxu0 %v3259_v5  ;;  %v3352_v5 = vld [vmem:[#allocation2 + $0x5cc] ss:$72 sps:$4 sm:$0xff]  }
  0xa4   : > { %2207 = vmatpush2.bf16.msra.mxu1 %v3262_v6  ;;  %2165 = vmatprep.subr.bf16.mxu0 %v3267_v8  ;;  %v3347_v6 = vld [vmem:[#allocation2 + $0x5c0] ss:$72 sps:$4 sm:$0xff]  }
  0xa5   : > { %2208 = vmatprep.subr.bf16.mxu1 %v3270_v9  ;;  %v3350_v8 = vld [vmem:[#allocation2 + $0x5c8] ss:$72 sps:$4 sm:$0xff]   ;;  %v3355_v9 = vld [vmem:[#allocation2 + $0x534] ss:$72 sps:$4 sm:$0xff]  }
  0xa7   : > { %2166 = vmatpush2.bf16.msra.mxu0 %v3265_v10  ;;  %v3358_v10 = vld [vmem:[#allocation2 + $0x53c] ss:$72 sps:$4 sm:$0xff]  }
  0xa8   : > { %2209 = vmatpush2.bf16.msra.mxu1 %v3268_v11  ;;  %2221 = vmatprep.subr.bf16.mxu0 %v3273_v12  ;;  %v3353_v11 = vld [vmem:[#allocation2 + $0x530] ss:$72 sps:$4 sm:$0xff]  }
  0xa9   : > { %2264 = vmatprep.subr.bf16.mxu1 %v3276_v13  ;;  %v3356_v12 = vld [vmem:[#allocation2 + $0x538] ss:$72 sps:$4 sm:$0xff]   ;;  %v3361_v13 = vld [vmem:[#allocation2 + $0x4a4] ss:$72 sps:$4 sm:$0xff]  }
  0xaa   : > { %2168 = vmatmul.mubr.bf16.vlgmr.msra.gmra.mxu0 %v3676_v7 }
  0xab   : > { %2211 = vmatmul.mubr.bf16.vlgmr.msra.gmra.mxu1 %v3676_v7  ;;  %2222 = vmatpush1.bf16.msra.mxu0 %v3271_v14  ;;  %v3364_v14 = vld [vmem:[#allocation2 + $0x4ac] ss:$72 sps:$4 sm:$0xff]  }
  0xac   : > { %2265 = vmatpush1.bf16.msra.mxu1 %v3274_v15  ;;  %2223 = vmatprep.subr.bf16.mxu0 %v3279_v16  ;;  %v3359_v15 = vld [vmem:[#allocation2 + $0x4a0] ss:$72 sps:$4 sm:$0xff]  }
  0xad   : > { %2266 = vmatprep.subr.bf16.mxu1 %v3282_v17  ;;  %3036 = vmatprep.mubr.msk.bf16.mxu0 %vm1990_vm1, %v3669_v50  ;;  %v3362_v16 = vld [vmem:[#allocation2 + $0x4a8] ss:$72 sps:$4 sm:$0xff]   ;;  %v3367_v17 = vld [vmem:[#allocation2 + $0x424] ss:$72 sps:$4 sm:$0xff]  }
  0xae   : > { %3038 = vmatprep.mubr.msk.bf16.mxu1 %vm1990_vm1, %v3669_v50  ;;  %v3298_v50 = vld [vmem:[#allocation2 + $0x1d8] ss:$72 sps:$4 sm:$0xff]  }
  0xaf   : > { %2224 = vmatpush1.bf16.msra.mxu0 %v3277_v18  ;;  %v3370_v18 = vld [vmem:[#allocation2 + $0x42c] ss:$72 sps:$4 sm:$0xff]  }
  0xb0   : > { %2267 = vmatpush1.bf16.msra.mxu1 %v3280_v19  ;;  %2225 = vmatprep.subr.bf16.mxu0 %v3285_v20  ;;  %v3365_v19 = vld [vmem:[#allocation2 + $0x420] ss:$72 sps:$4 sm:$0xff]  }
  0xb1   : > { %2268 = vmatprep.subr.bf16.mxu1 %v3288_v21  ;;  %v3368_v20 = vld [vmem:[#allocation2 + $0x428] ss:$72 sps:$4 sm:$0xff]   ;;  %v3373_v21 = vld [vmem:[#allocation2 + $0x394] ss:$72 sps:$4 sm:$0xff]  }
  0xb3   : > { %2226 = vmatpush1.bf16.msra.mxu0 %v3283_v22  ;;  %v3376_v22 = vld [vmem:[#allocation2 + $0x39c] ss:$72 sps:$4 sm:$0xff]  }
  0xb4   : > { %2269 = vmatpush1.bf16.msra.mxu1 %v3286_v23  ;;  %2227 = vmatprep.subr.bf16.mxu0 %v3291_v24  ;;  %v3371_v23 = vld [vmem:[#allocation2 + $0x390] ss:$72 sps:$4 sm:$0xff]  }
  0xb5   : > { %2270 = vmatprep.subr.bf16.mxu1 %v3294_v25  ;;  %v3374_v24 = vld [vmem:[#allocation2 + $0x398] ss:$72 sps:$4 sm:$0xff]   ;;  %v3379_v25 = vld [vmem:[#allocation2 + $0x304] ss:$72 sps:$4 sm:$0xff]  }
  0xb7   : > { %2228 = vmatpush1.bf16.msra.mxu0 %v3289_v26  ;;  %v3382_v26 = vld [vmem:[#allocation2 + $0x30c] ss:$72 sps:$4 sm:$0xff]  }
  0xb8   : > { %2271 = vmatpush1.bf16.msra.mxu1 %v3292_v27  ;;  %2229 = vmatprep.subr.bf16.mxu0 %v3297_v28  ;;  %v3701_v27 = vld [vmem:[%s3666_s6 + $0x4] ss:$8 sps:$4 sm:$0xff]   ;;  %v3377_v28 = vld [vmem:[#allocation2 + $0x300] ss:$72 sps:$4 sm:$0xff]  }
  0xb9   : > { %2272 = vmatprep.subr.bf16.mxu1 %v3300_v29  ;;  %v3385_v29 = vld [vmem:[#allocation2 + $0x274] ss:$72 sps:$4 sm:$0xff]  }
  0xbb   : > { %2230 = vmatpush1.bf16.msra.mxu0 %v3295_v30  ;;  %v3388_v30 = vld [vmem:[#allocation2 + $0x27c] ss:$72 sps:$4 sm:$0xff]  }
  0xbc   : > { %2273 = vmatpush1.bf16.msra.mxu1 %v3298_v50  ;;  %2231 = vmatprep.subr.bf16.mxu0 %v3303_v31  ;;  %v3383_v50 = vld [vmem:[#allocation2 + $0x270] ss:$72 sps:$4 sm:$0xff]  }
  0xbd   : > { %2274 = vmatprep.subr.bf16.mxu1 %v3306_v32  ;;  %v3386_v31 = vld [vmem:[#allocation2 + $0x278] ss:$72 sps:$4 sm:$0xff]   ;;  %v3391_v32 = vld [vmem:[#allocation2 + $0x1e4] ss:$72 sps:$4 sm:$0xff]  }
  0xbf   : > { %2232 = vmatpush1.bf16.msra.mxu0 %v3301_v33  ;;  %v3394_v33 = vld [vmem:[#allocation2 + $0x1ec] ss:$72 sps:$4 sm:$0xff]  }
  0xc0   : > { %2275 = vmatpush1.bf16.msra.mxu1 %v3304_v34  ;;  %2233 = vmatprep.subr.bf16.mxu0 %v3309_v35  ;;  %v3389_v34 = vld [vmem:[#allocation2 + $0x1e0] ss:$72 sps:$4 sm:$0xff]  }
  0xc1   : > { %2276 = vmatprep.subr.bf16.mxu1 %v3312_v36  ;;  %v3392_v35 = vld [vmem:[#allocation2 + $0x1e8] ss:$72 sps:$4 sm:$0xff]   ;;  %v3397_v36 = vld [vmem:[#allocation2 + $0x154] ss:$72 sps:$4 sm:$0xff]  }
  0xc3   : > { %2234 = vmatpush1.bf16.msra.mxu0 %v3307_v37  ;;  %v3400_v37 = vld [vmem:[#allocation2 + $0x15c] ss:$72 sps:$4 sm:$0xff]  }
  0xc4   : > { %2277 = vmatpush1.bf16.msra.mxu1 %v3310_v38  ;;  %2235 = vmatprep.subr.bf16.mxu0 %v3315_v39  ;;  %v3395_v38 = vld [vmem:[#allocation2 + $0x150] ss:$72 sps:$4 sm:$0xff]  }
  0xc5   : > { %2278 = vmatprep.subr.bf16.mxu1 %v3318_v40  ;;  %v3398_v39 = vld [vmem:[#allocation2 + $0x158] ss:$72 sps:$4 sm:$0xff]   ;;  %v3403_v40 = vld [vmem:[#allocation2 + $0xc4] ss:$72 sps:$4 sm:$0xff]  }
  0xc7   : > { %2236 = vmatpush1.bf16.msra.mxu0 %v3313_v43  ;;  %v3404_v43 = vld [vmem:[#allocation2 + $0xc8] ss:$72 sps:$4 sm:$0xff]  }
  0xc8   : > { %2279 = vmatpush1.bf16.msra.mxu1 %v3316_v44  ;;  %3035 = vmatprep.subr.msk.bf16.mxu0 %vm1994_vm0, %v3018_v45  ;;  %v3409_v44 = vld [vmem:[#allocation2 + $0x34] ss:$72 sps:$4 sm:$0xff]  }
  0xc9   : > { %3037 = vmatprep.subr.msk.bf16.mxu1 %vm1994_vm0, %v3020_v46  ;;  %v3412_v45 = vld [vmem:[#allocation2 + $0x3c] ss:$72 sps:$4 sm:$0xff]  }
  0xca   : > { %v485_v46 = vld [vmem:[#allocation2 + $0x8a0] sm:$0xff] }
  0xcb   : > { %2238 = vmatpush2.bf16.msra.mxu0 %v2020_v51  ;;  %v3022_v51 = vcombine.high %v485_v46, %v485_v46 }
  0xcc   : > { %2281 = vmatpush2.bf16.msra.mxu1 %v2026_v52  ;;  %2239 = vmatprep.subr.bf16.mxu0 %v3325_v49  ;;  %v3410_v49 = vld [vmem:[#allocation2 + $0x38] ss:$72 sps:$4 sm:$0xff]   ;;  %v3024_v52 = vcombine.high %v486_v47, %v486_v47 }
  0xcd   : > { %2282 = vmatprep.subr.bf16.mxu1 %v3328_v53  ;;  %v3021_v53 = vcombine.low %v485_v46, %v485_v46  ;;  %v3491_v46 = vld [vmem:[#allocation2 + $0x700] ss:$72 sps:$4 sm:$0xff]  }
  0xcf   : > { %2240 = vmatpush2.bf16.msra.mxu0 %v3323_v54  ;;  %v3023_v54 = vcombine.low %v486_v47, %v486_v47  ;;  %v3496_v47 = vld [vmem:[#allocation2 + $0x674] ss:$72 sps:$4 sm:$0xff]  }
  0xd0   : > { %2283 = vmatpush2.bf16.msra.mxu1 %v3326_v55  ;;  %2241 = vmatprep.subr.bf16.mxu0 %v3331_v56  ;;  %v2032_v55 = vsel %vm1994_vm0, %v3021_v53, 0  ;;  %v3502_v53 = vld [vmem:[#allocation2 + $0x554] ss:$72 sps:$4 sm:$0xff]  }
  0xd1   : > { %2284 = vmatprep.subr.bf16.mxu1 %v3334_v57  ;;  %v2038_v56 = vsel %vm1994_vm0, %v3023_v54, 0  ;;  %v3419_v57 = vld [vmem:[#allocation2 + $0x814] ss:$72 sps:$4 sm:$0xff]   ;;  %v496_v54 = vlaneseq }
  0xd3   : > { %2242 = vmatpush2.bf16.msra.mxu0 %v3329_v58  ;;  %v3422_v58 = vld [vmem:[#allocation2 + $0x81c] ss:$72 sps:$4 sm:$0xff]  }
  0xd4   : > { %2285 = vmatpush2.bf16.msra.mxu1 %v3332_v59  ;;  %2243 = vmatprep.subr.bf16.mxu0 %v3337_v60  ;;  %v3417_v59 = vld [vmem:[#allocation2 + $0x810] ss:$72 sps:$4 sm:$0xff]  }
  0xd5   : > { %2286 = vmatprep.subr.bf16.mxu1 %v3340_v61  ;;  %v3420_v60 = vld [vmem:[#allocation2 + $0x818] ss:$72 sps:$4 sm:$0xff]   ;;  %v3425_v61 = vld [vmem:[#allocation2 + $0x784] ss:$72 sps:$4 sm:$0xff]  }
  0xd7   : > { %2244 = vmatpush2.bf16.msra.mxu0 %v3335_v62  ;;  %v3428_v62 = vld [vmem:[#allocation2 + $0x78c] ss:$72 sps:$4 sm:$0xff]  }
  0xd8   : > { %2287 = vmatpush2.bf16.msra.mxu1 %v3338_v63  ;;  %2245 = vmatprep.subr.bf16.mxu0 %v3343_v0  ;;  %v3423_v63 = vld [vmem:[#allocation2 + $0x780] ss:$72 sps:$4 sm:$0xff]  }
  0xd9   : > { %2288 = vmatprep.subr.bf16.mxu1 %v3346_v1  ;;  %v3426_v0 = vld [vmem:[#allocation2 + $0x788] ss:$72 sps:$4 sm:$0xff]   ;;  %v3431_v1 = vld [vmem:[#allocation2 + $0x6f4] ss:$72 sps:$4 sm:$0xff]  }
  0xdb   : > { %2246 = vmatpush2.bf16.msra.mxu0 %v3341_v2  ;;  %v3434_v2 = vld [vmem:[#allocation2 + $0x6fc] ss:$72 sps:$4 sm:$0xff]  }
  0xdc   : > { %2289 = vmatpush2.bf16.msra.mxu1 %v3344_v3  ;;  %2247 = vmatprep.subr.bf16.mxu0 %v3349_v4  ;;  %v3429_v3 = vld [vmem:[#allocation2 + $0x6f0] ss:$72 sps:$4 sm:$0xff]  }
  0xdd   : > { %2290 = vmatprep.subr.bf16.mxu1 %v3352_v5  ;;  %v3432_v4 = vld [vmem:[#allocation2 + $0x6f8] ss:$72 sps:$4 sm:$0xff]   ;;  %v3437_v5 = vld [vmem:[#allocation2 + $0x664] ss:$72 sps:$4 sm:$0xff]  }
  0xdf   : > { %2248 = vmatpush2.bf16.msra.mxu0 %v3347_v6  ;;  %v3440_v6 = vld [vmem:[#allocation2 + $0x66c] ss:$72 sps:$4 sm:$0xff]  }
  0xe0   : > { %2291 = vmatpush2.bf16.msra.mxu1 %v3350_v8  ;;  %2249 = vmatprep.subr.bf16.mxu0 %v3355_v9  ;;  %v3435_v8 = vld [vmem:[#allocation2 + $0x660] ss:$72 sps:$4 sm:$0xff]  }
  0xe1   : > { %2292 = vmatprep.subr.bf16.mxu1 %v3358_v10  ;;  %v3438_v9 = vld [vmem:[#allocation2 + $0x668] ss:$72 sps:$4 sm:$0xff]   ;;  %v3443_v10 = vld [vmem:[#allocation2 + $0x5d4] ss:$72 sps:$4 sm:$0xff]  }
  0xe3   : > { %2250 = vmatpush2.bf16.msra.mxu0 %v3353_v11  ;;  %v3446_v11 = vld [vmem:[#allocation2 + $0x5dc] ss:$72 sps:$4 sm:$0xff]  }
  0xe4   : > { %2293 = vmatpush2.bf16.msra.mxu1 %v3356_v12  ;;  %2251 = vmatprep.subr.bf16.mxu0 %v3361_v13  ;;  %v3441_v12 = vld [vmem:[#allocation2 + $0x5d0] ss:$72 sps:$4 sm:$0xff]  }
  0xe5   : > { %2294 = vmatprep.subr.bf16.mxu1 %v3364_v14  ;;  %v3444_v13 = vld [vmem:[#allocation2 + $0x5d8] ss:$72 sps:$4 sm:$0xff]   ;;  %v3449_v14 = vld [vmem:[#allocation2 + $0x544] ss:$72 sps:$4 sm:$0xff]  }
  0xe7   : > { %2252 = vmatpush2.bf16.msra.mxu0 %v3359_v15  ;;  %v3452_v15 = vld [vmem:[#allocation2 + $0x54c] ss:$72 sps:$4 sm:$0xff]  }
  0xe8   : > { %2295 = vmatpush2.bf16.msra.mxu1 %v3362_v16  ;;  %2307 = vmatprep.subr.bf16.mxu0 %v3367_v17  ;;  %v3447_v16 = vld [vmem:[#allocation2 + $0x540] ss:$72 sps:$4 sm:$0xff]  }
  0xe9   : > { %2350 = vmatprep.subr.bf16.mxu1 %v3370_v18  ;;  %v3450_v17 = vld [vmem:[#allocation2 + $0x548] ss:$72 sps:$4 sm:$0xff]   ;;  %v3455_v18 = vld [vmem:[#allocation2 + $0x4b4] ss:$72 sps:$4 sm:$0xff]  }
  0xea   : > { %2254 = vmatmul.mubr.bf16.vlgmr.msra.gmra.mxu0 %v3676_v7 }
  0xeb   : > { %2297 = vmatmul.mubr.bf16.vlgmr.msra.gmra.mxu1 %v3676_v7  ;;  %2308 = vmatpush1.bf16.msra.mxu0 %v3365_v19  ;;  %v3380_v7 = vld [vmem:[#allocation2 + $0x308] ss:$72 sps:$4 sm:$0xff]   ;;  %v3458_v19 = vld [vmem:[#allocation2 + $0x4bc] ss:$72 sps:$4 sm:$0xff]  }
  0xec   : > { %2351 = vmatpush1.bf16.msra.mxu1 %v3368_v20  ;;  %2309 = vmatprep.subr.bf16.mxu0 %v3373_v21  ;;  %v3453_v20 = vld [vmem:[#allocation2 + $0x4b0] ss:$72 sps:$4 sm:$0xff]  }
  0xed   : > { %2352 = vmatprep.subr.bf16.mxu1 %v3376_v22  ;;  %3040 = vmatprep.mubr.msk.bf16.mxu0 %vm1990_vm1, %v3701_v27  ;;  %v3456_v21 = vld [vmem:[#allocation2 + $0x4b8] ss:$72 sps:$4 sm:$0xff]   ;;  %v3461_v22 = vld [vmem:[#allocation2 + $0x434] ss:$72 sps:$4 sm:$0xff]  }
  0xee   : > { %3042 = vmatprep.mubr.msk.bf16.mxu1 %vm1990_vm1, %v3701_v27 }
  0xef   : > { %2310 = vmatpush1.bf16.msra.mxu0 %v3371_v23  ;;  %v3459_v23 = vld [vmem:[#allocation2 + $0x430] ss:$72 sps:$4 sm:$0xff]  }
  0xf0   : > { %2353 = vmatpush1.bf16.msra.mxu1 %v3374_v24  ;;  %2311 = vmatprep.subr.bf16.mxu0 %v3379_v25  ;;  %v3464_v24 = vld [vmem:[#allocation2 + $0x3a4] ss:$72 sps:$4 sm:$0xff]   ;;  %v3712_v25 = vld [vmem:[%s3666_s6] ss:$8 sps:$4 sm:$0xff]  }
  0xf1   : > { %2354 = vmatprep.subr.bf16.mxu1 %v3382_v26  ;;  %v3462_v26 = vld [vmem:[#allocation2 + $0x3a0] ss:$72 sps:$4 sm:$0xff]  }
  0xf3   : > { %2312 = vmatpush1.bf16.msra.mxu0 %v3377_v28  ;;  %v3467_v28 = vld [vmem:[#allocation2 + $0x314] ss:$72 sps:$4 sm:$0xff]  }
  0xf4   : > { %2355 = vmatpush1.bf16.msra.mxu1 %v3380_v7  ;;  %2313 = vmatprep.subr.bf16.mxu0 %v3385_v29  ;;  %v3465_v7 = vld [vmem:[#allocation2 + $0x310] ss:$72 sps:$4 sm:$0xff]   ;;  %v3470_v29 = vld [vmem:[#allocation2 + $0x284] ss:$72 sps:$4 sm:$0xff]  }
  0xf5   : > { %2356 = vmatprep.subr.bf16.mxu1 %v3388_v30  ;;  %v3468_v30 = vld [vmem:[#allocation2 + $0x280] ss:$72 sps:$4 sm:$0xff]  }
  0xf7   : > { %2314 = vmatpush1.bf16.msra.mxu0 %v3383_v50  ;;  %v3473_v50 = vld [vmem:[#allocation2 + $0x1f4] ss:$72 sps:$4 sm:$0xff]  }
  0xf8   : > { %2357 = vmatpush1.bf16.msra.mxu1 %v3386_v31  ;;  %2315 = vmatprep.subr.bf16.mxu0 %v3391_v32  ;;  %v3471_v31 = vld [vmem:[#allocation2 + $0x1f0] ss:$72 sps:$4 sm:$0xff]   ;;  %v3476_v32 = vld [vmem:[#allocation2 + $0x164] ss:$72 sps:$4 sm:$0xff]  }
  0xf9   : > { %2358 = vmatprep.subr.bf16.mxu1 %v3394_v33  ;;  %v3474_v33 = vld [vmem:[#allocation2 + $0x160] ss:$72 sps:$4 sm:$0xff]  }
  0xfb   : > { %2316 = vmatpush1.bf16.msra.mxu0 %v3389_v34  ;;  %v3479_v34 = vld [vmem:[#allocation2 + $0xd4] ss:$72 sps:$4 sm:$0xff]  }
  0xfc   : > { %2359 = vmatpush1.bf16.msra.mxu1 %v3392_v35  ;;  %2317 = vmatprep.subr.bf16.mxu0 %v3397_v36  ;;  %v3482_v35 = vld [vmem:[#allocation2 + $0x44] ss:$72 sps:$4 sm:$0xff]   ;;  %v487_v36 = vld [vmem:[#allocation2 + $0x8b0] sm:$0xff] }
  0xfd   : > { %2360 = vmatprep.subr.bf16.mxu1 %v3400_v37  ;;  %v3480_v37 = vld [vmem:[#allocation2 + $0x40] ss:$72 sps:$4 sm:$0xff]  }
  0xff   : > { %2318 = vmatpush1.bf16.msra.mxu0 %v3395_v38  ;;  %v3026_v38 = vcombine.high %v487_v36, %v487_v36 }
 0x100   : > { %2361 = vmatpush1.bf16.msra.mxu1 %v3398_v39  ;;  %2319 = vmatprep.subr.bf16.mxu0 %v3403_v40  ;;  %v3025_v39 = vcombine.low %v487_v36, %v487_v36 }
 0x101   : > { %2362 = vmatprep.subr.bf16.mxu1 %v3406_v41  ;;  %v3487_v41 = vld [vmem:[#allocation2 + $0x824] ss:$72 sps:$4 sm:$0xff]  }
 0x102   : > { %v2044_v40 = vsel %vm1994_vm0, %v3025_v39, 0 }
 0x103   : > { %2320 = vmatpush1.bf16.msra.mxu0 %v3401_v42  ;;  %v3485_v42 = vld [vmem:[#allocation2 + $0x820] ss:$72 sps:$4 sm:$0xff]  }
 0x104   : > { %2363 = vmatpush1.bf16.msra.mxu1 %v3404_v43  ;;  %2321 = vmatprep.subr.bf16.mxu0 %v3409_v44  ;;  %v3490_v43 = vld [vmem:[#allocation2 + $0x794] ss:$72 sps:$4 sm:$0xff]   ;;  %v3488_v44 = vld [vmem:[#allocation2 + $0x790] ss:$72 sps:$4 sm:$0xff]  }
 0x105   : > { %2364 = vmatprep.subr.bf16.mxu1 %v3412_v45  ;;  %v3493_v45 = vld [vmem:[#allocation2 + $0x704] ss:$72 sps:$4 sm:$0xff]  }
 0x107   : > { %2322 = vmatpush1.bf16.msra.mxu0 %v3407_v48  ;;  %v3494_v48 = vld [vmem:[#allocation2 + $0x670] ss:$72 sps:$4 sm:$0xff]  }
 0x108   : > { %2365 = vmatpush1.bf16.msra.mxu1 %v3410_v49  ;;  %3039 = vmatprep.subr.msk.bf16.mxu0 %vm1994_vm0, %v3022_v51  ;;  %v3499_v49 = vld [vmem:[#allocation2 + $0x5e4] ss:$72 sps:$4 sm:$0xff]   ;;  %v3497_v51 = vld [vmem:[#allocation2 + $0x5e0] ss:$72 sps:$4 sm:$0xff]  }
 0x109   : > { %3041 = vmatprep.subr.msk.bf16.mxu1 %vm1994_vm0, %v3024_v52 }
 0x10b   : > { %2324 = vmatpush2.bf16.msra.mxu0 %v2032_v55  ;;  %v3500_v55 = vld [vmem:[#allocation2 + $0x550] ss:$72 sps:$4 sm:$0xff]  }
 0x10c   : > { %2367 = vmatpush2.bf16.msra.mxu1 %v2038_v56  ;;  %2325 = vmatprep.subr.bf16.mxu0 %v3419_v57  ;;  %v3505_v57 = vld [vmem:[#allocation2 + $0x4c4] ss:$72 sps:$4 sm:$0xff]  }
 0x10d   : > { %2368 = vmatprep.subr.bf16.mxu1 %v3422_v58  ;;  %v3724_v58 = vshrl.u32 %v496_v54, 7 }
 0x10f   : > { %2326 = vmatpush2.bf16.msra.mxu0 %v3417_v59  ;;  %v3503_v59 = vld [vmem:[#allocation2 + $0x4c0] ss:$72 sps:$4 sm:$0xff]  }
 0x110   : > { %2369 = vmatpush2.bf16.msra.mxu1 %v3420_v60  ;;  %2327 = vmatprep.subr.bf16.mxu0 %v3425_v61  ;;  %v3727_v60 = vsub.s32 4, %v3724_v58 }
 0x111   : > { %2370 = vmatprep.subr.bf16.mxu1 %v3428_v62  ;;  %v3732_v62 = vsub.s32 5, %v3724_v58 }
 0x113   : > { %2328 = vmatpush2.bf16.msra.mxu0 %v3423_v63  ;;  %v3734_v63 = vld [vmem:[#allocation4] ss:$2 sm:$0xff] }
 0x114   : > { %2371 = vmatpush2.bf16.msra.mxu1 %v3426_v0  ;;  %2329 = vmatprep.subr.bf16.mxu0 %v3431_v1  ;;  %v515_v0 = vrot.slane %v3734_v63, %v3727_v60 }
 0x115   : > { %2372 = vmatprep.subr.bf16.mxu1 %v3434_v2  ;;  %v519_v2 = vrot.slane %v3734_v63, %v3732_v62 }
 0x117   : > { %2330 = vmatpush2.bf16.msra.mxu0 %v3429_v3  ;;  %v3742_v3 = vld [vmem:[#allocation4 + $0x1] ss:$2 sm:$0xff] }
 0x118   : > { %2373 = vmatpush2.bf16.msra.mxu1 %v3432_v4  ;;  %2331 = vmatprep.subr.bf16.mxu0 %v3437_v5 }
 0x119   : > { %2374 = vmatprep.subr.bf16.mxu1 %v3440_v6  ;;  %v2500_v6 = vrot.slane %v3742_v3, %v3727_v60 }
 0x11b   : > { %2332 = vmatpush2.bf16.msra.mxu0 %v3435_v8 }
 0x11c   : > { %2375 = vmatpush2.bf16.msra.mxu1 %v3438_v9  ;;  %2333 = vmatprep.subr.bf16.mxu0 %v3443_v10 }
 0x11d   : > { %2376 = vmatprep.subr.bf16.mxu1 %v3446_v11  ;;  %v2504_v11 = vrot.slane %v3742_v3, %v3732_v62 }
 0x11f   : > { %2334 = vmatpush2.bf16.msra.mxu0 %v3441_v12 }
 0x120   : > { %2377 = vmatpush2.bf16.msra.mxu1 %v3444_v13  ;;  %2335 = vmatprep.subr.bf16.mxu0 %v3449_v14 }
 0x121   : > { %2378 = vmatprep.subr.bf16.mxu1 %v3452_v15 }
 0x123   : > { %2336 = vmatpush2.bf16.msra.mxu0 %v3447_v16 }
 0x124   : > { %2379 = vmatpush2.bf16.msra.mxu1 %v3450_v17  ;;  %2337 = vmatprep.subr.bf16.mxu0 %v3455_v18 }
 0x125   : > { %2380 = vmatprep.subr.bf16.mxu1 %v3458_v19 }
 0x127   : > { %2338 = vmatpush2.bf16.msra.mxu0 %v3453_v20 }
 0x128   : > { %2381 = vmatpush2.bf16.msra.mxu1 %v3456_v21  ;;  %2393 = vmatprep.subr.bf16.mxu0 %v3461_v22 }
 0x12a   : > { %2340 = vmatmul.mubr.bf16.vlgmr.msra.gmra.mxu0 %v3712_v25  ;;  %v3720_v52 = vpop.f32.mrf.mxu0 }
 0x12b   : > { %2383 = vmatmul.mubr.bf16.vlgmr.msra.gmra.mxu1 %v3712_v25  ;;  %2394 = vmatpush1.bf16.msra.mxu0 %v3459_v23  ;;  %v2126_v23 = vpop.f32.mrf.mxu1 }
 0x12c   : > { %3044 = vmatprep.mubr.msk.bf16.mxu0 %vm1990_vm1, %v3701_v27  ;;  %2395 = vmatprep.subr.bf16.mxu0 %v3464_v24  ;;  %v3477_v27 = vld [vmem:[#allocation2 + $0xd0] ss:$72 sps:$4 sm:$0xff]   ;;  %v3722_v56 = vpop.f32.mrf.mxu0 }
 0x12d   : > { %v2128_v24 = vpop.f32.mrf.mxu1 }
 0x12e   : > { %v3729_v61 = vpop.f32.mrf.mxu0 }
 0x12f   : > { %2396 = vmatpush1.bf16.msra.mxu0 %v3462_v26 }
 0x130   : > { %2397 = vmatprep.subr.bf16.mxu0 %v3467_v28  ;;  %v3738_v1 = vpop.f32.mrf.mxu0 }
 0x133   : > { %2398 = vmatpush1.bf16.msra.mxu0 %v3465_v7 }
 0x134   : > { %2399 = vmatprep.subr.bf16.mxu0 %v3470_v29 }
 0x137   : > { %2400 = vmatpush1.bf16.msra.mxu0 %v3468_v30  ;;  %v3759_v30 = vld [vmem:[#allocation4 + $0x10] ss:$2 sm:$0xff] }
 0x138   : > { %2401 = vmatprep.subr.bf16.mxu0 %v3473_v50  ;;  %v506_v50 = vsub.s32 2, %v3724_v58 }
 0x13b   : > { %2402 = vmatpush1.bf16.msra.mxu0 %v3471_v31  ;;  %v510_v31 = vsub.s32 3, %v3724_v58 }
 0x13c   : > { %2403 = vmatprep.subr.bf16.mxu0 %v3476_v32  ;;  %v539_v32 = vrot.slane %v3759_v30, %v506_v50 }
 0x13f   : > { %2404 = vmatpush1.bf16.msra.mxu0 %v3474_v33 }
 0x140   : > { %2405 = vmatprep.subr.bf16.mxu0 %v3479_v34  ;;  %v3766_v34 = vld [vmem:[#allocation4 + $0x11] ss:$2 sm:$0xff] }
 0x143   : > { %2406 = vmatpush1.bf16.msra.mxu0 %v3477_v27  ;;  %v543_v27 = vrot.slane %v3759_v30, %v510_v31 }
 0x144   : > { %2407 = vmatprep.subr.bf16.mxu0 %v3482_v35 }
 0x147   : > { %2408 = vmatpush1.bf16.msra.mxu0 %v3480_v37  ;;  %v2524_v37 = vrot.slane %v3766_v34, %v506_v50 }
 0x148   : > { %3043 = vmatprep.subr.msk.bf16.mxu0 %vm1994_vm0, %v3026_v38 }
 0x14b   : > { %2410 = vmatpush2.bf16.msra.mxu0 %v2044_v40 }
 0x14c   : > { %2411 = vmatprep.subr.bf16.mxu0 %v3487_v41  ;;  %v2528_v41 = vrot.slane %v3766_v34, %v510_v31 }
 0x14f   : > { %2412 = vmatpush2.bf16.msra.mxu0 %v3485_v42 }
 0x150   : > { %2413 = vmatprep.subr.bf16.mxu0 %v3490_v43 }
 0x153   : > { %2414 = vmatpush2.bf16.msra.mxu0 %v3488_v44 }
 0x154   : > { %2415 = vmatprep.subr.bf16.mxu0 %v3493_v45 }
 0x157   : > { %2416 = vmatpush2.bf16.msra.mxu0 %v3491_v46 }
 0x158   : > { %2417 = vmatprep.subr.bf16.mxu0 %v3496_v47 }
 0x15b   : > { %2418 = vmatpush2.bf16.msra.mxu0 %v3494_v48 }
 0x15c   : > { %2419 = vmatprep.subr.bf16.mxu0 %v3499_v49 }
 0x15f   : > { %2420 = vmatpush2.bf16.msra.mxu0 %v3497_v51 }
 0x160   : > { %2421 = vmatprep.subr.bf16.mxu0 %v3502_v53 }
 0x163   : > { %2422 = vmatpush2.bf16.msra.mxu0 %v3500_v55 }
 0x164   : > { %2423 = vmatprep.subr.bf16.mxu0 %v3505_v57 }
 0x167   : > { %2424 = vmatpush2.bf16.msra.mxu0 %v3503_v59 }
 0x16a   : > { %v2169_v4 = vpop.f32.mrf.mxu0  ;;  %2426 = vmatmul.mubr.bf16.vlgmr.msra.gmra.mxu0 %v3712_v25  ;;  %v2130_v25 = vpop.f32.mrf.mxu1 }
 0x16b   : > { %v2170_v5 = vadd.f32 %v2169_v4, %v515_v0  ;;  %v3791_v4 = vsub.s32 1, %v3724_v58 }
 0x16c   : > { %v2171_v8 = vpop.f32.mrf.mxu0  ;;  %v2132_v26 = vpop.f32.mrf.mxu1 }
 0x16d   : > { %v2440_v9 = vmax.f32 %v2170_v5, 0.0  ;;  %v2172_v10 = vadd.f32 %v2171_v8, %v519_v2  ;;  %v522_v8 = vsub.s32 6, %v3724_v58 }
 0x16e   : > { %v2173_v12 = vpop.f32.mrf.mxu0  ;;  %v2212_v28 = vpop.f32.mrf.mxu1 }
 0x16f   : > { %v3749_v13 = vadd.f32 %v2500_v6, %v2440_v9  ;;  %v2441_v14 = vmax.f32 %v2172_v10, 0.0  ;;  %v2174_v15 = vadd.f32 %v2173_v12, %v515_v0  ;;  %v3798_v9 = vsub.s32 7, %v3724_v58 }
 0x170   : > { %v2175_v16 = vpop.f32.mrf.mxu0  ;;  %v2214_v7 = vpop.f32.mrf.mxu1  ;;  %v503_v10 = vrot.slane %v3734_v63, %v3791_v4 }
 0x171   : > { %v3751_v17 = vadd.f32 %v2504_v11, %v2441_v14  ;;  %v2176_v18 = vadd.f32 %v2175_v16, %v519_v2  ;;  %v2458_v19 = vmax.f32 %v2174_v15, 0.0  ;;  %v3788_v2 = vsub.s32 0, %v3724_v58 }
 0x172   : > { %v3757_v29 = vpop.f32.mrf.mxu1  ;;  %v523_v16 = vrot.slane %v3734_v63, %v522_v8 }
 0x173   : > { %v2459_v20 = vmax.f32 %v2176_v18, 0.0  ;;  %v3753_v21 = vadd.f32 %v2500_v6, %v2458_v19  ;;  %v499_v5 = vrot.slane %v3734_v63, %v3788_v2  ;;  %v507_v6 = vrot.slane %v3734_v63, %v506_v50 }
 0x174   : > { %v3764_v33 = vpop.f32.mrf.mxu1  ;;  %v527_v18 = vrot.slane %v3734_v63, %v3798_v9  ;;  %v2086_v19 = vadd.f32 %v3722_v56, %v503_v10 }
 0x175   : > { %v3755_v22 = vadd.f32 %v2504_v11, %v2459_v20  ;;  %v511_v11 = vrot.slane %v3734_v63, %v510_v31  ;;  %v2084_v14 = vadd.f32 %v3720_v52, %v499_v5  ;;  %v2127_v15 = vadd.f32 %v2126_v23, %v507_v6 }
 0x176   : > { %v2088_v20 = vadd.f32 %v3729_v61, %v499_v5  ;;  %v2492_v52 = vrot.slane %v3742_v3, %v506_v50  ;;  %v531_v23 = vrot.slane %v3759_v30, %v3788_v2  ;;  %v2090_v63 = vadd.f32 %v3738_v1, %v503_v10 }
 0x177   : > { %v2129_v58 = vadd.f32 %v2128_v24, %v511_v11  ;;  %v2438_v56 = vmax.f32 %v2127_v15, 0.0  ;;  %v2496_v61 = vrot.slane %v3742_v3, %v510_v31  ;;  %v2213_v24 = vadd.f32 %v2212_v28, %v523_v16 }
 0x178   : > { %v2455_v28 = vmax.f32 %v2090_v63, 0.0  ;;  %v2217_v15 = vadd.f32 %v3757_v29, %v523_v16  ;;  %v2532_v29 = vrot.slane %v3766_v34, %v3727_v60  ;;  %v551_v16 = vrot.slane %v3759_v30, %v3732_v62 }
 0x1aa   : > { %v2255_v12 = vpop.f32.mrf.mxu0 }
 0x1ab   : > { %v2298_v35 = vpop.f32.mrf.mxu1  ;;  %v2256_v1 = vadd.f32 %v2255_v12, %v531_v23 }
 0x1ac   : > { %v2299_v36 = vadd.f32 %v2298_v35, %v539_v32  ;;  %v2484_v35 = vrot.slane %v3742_v3, %v3788_v2 }
 0x1ad   : > { %v2300_v38 = vpop.f32.mrf.mxu1 }
 0x1ae   : > { %v2446_v39 = vmax.f32 %v2299_v36, 0.0  ;;  %v2301_v40 = vadd.f32 %v2300_v38, %v543_v27  ;;  %v2488_v36 = vrot.slane %v3742_v3, %v3791_v4  ;;  %v2133_v38 = vadd.f32 %v2132_v26, %v511_v11 }
 0x1af   : > { %v2302_v42 = vpop.f32.mrf.mxu1  ;;  %v2516_v26 = vrot.slane %v3766_v34, %v3788_v2 }
 0x1b0   : > { %v3771_v43 = vadd.f32 %v2524_v37, %v2446_v39  ;;  %v2447_v44 = vmax.f32 %v2301_v40, 0.0  ;;  %v2303_v45 = vadd.f32 %v2302_v42, %v539_v32  ;;  %v2131_v32 = vadd.f32 %v2130_v25, %v507_v6 }
 0x1b1   : > { %v2304_v46 = vpop.f32.mrf.mxu1  ;;  %v2215_v25 = vadd.f32 %v2214_v7, %v527_v18  ;;  %v535_v39 = vrot.slane %v3759_v30, %v3791_v4  ;;  %v2437_v40 = vmax.f32 %v2086_v19, 0.0  ;;  %v2439_v42 = vmax.f32 %v2129_v58, 0.0 }
 0x1b2   : > { %v2611_v47 = vmax.f32 %v3749_v13, %v3771_v43  ;;  %v3775_v48 = vadd.f32 %v2528_v41, %v2447_v44  ;;  %v2464_v49 = vmax.f32 %v2303_v45, 0.0  ;;  %v2305_v51 = vadd.f32 %v2304_v46, %v543_v27  ;;  %v2257_v27 = vpop.f32.mrf.mxu0 }
 0x1b3   : > { %v2456_v44 = vmax.f32 %v2131_v32, 0.0  ;;  %v2508_v45 = vrot.slane %v3742_v3, %v522_v8  ;;  %v2512_v46 = vrot.slane %v3742_v3, %v3798_v9  ;;  %v3827_v7 = vadd.f32 %v2492_v52, %v2438_v56 }
 0x1b4   : > { %v2612_v53 = vmax.f32 %v3751_v17, %v3775_v48  ;;  %v3779_v54 = vadd.f32 %v2524_v37, %v2464_v49  ;;  %v2465_v55 = vmax.f32 %v2305_v51, 0.0  ;;  %v2436_v37 = vmax.f32 %v2084_v14, 0.0  ;;  %v2259_v50 = vpop.f32.mrf.mxu0 }
 0x1b5   : > { %v2457_v49 = vmax.f32 %v2133_v38, 0.0  ;;  %v2442_v51 = vmax.f32 %v2213_v24, 0.0  ;;  %v2258_v5 = vadd.f32 %v2257_v27, %v535_v39  ;;  %v2520_v6 = vrot.slane %v3766_v34, %v3791_v4 }
 0x1b6   : > { %v2617_v57 = vmax.f32 %v3753_v21, %v3779_v54  ;;  %v3783_v59 = vadd.f32 %v2528_v41, %v2465_v55  ;;  %v2454_v41 = vmax.f32 %v2088_v20, 0.0  ;;  %v3825_v31 = vadd.f32 %v2484_v35, %v2436_v37  ;;  %v2261_v14 = vpop.f32.mrf.mxu0 }
 0x1b7   : > { %v2443_v55 = vmax.f32 %v2215_v25, 0.0  ;;  %v3831_v10 = vadd.f32 %v2488_v36, %v2437_v40  ;;  %v3835_v3 = vadd.f32 %v2496_v61, %v2439_v42  ;;  %v3837_v12 = vadd.f32 %v2492_v52, %v2456_v44 }
 0x1b8   : > { %v2618_v0 = vmax.f32 %v3755_v22, %v3783_v59  ;;  %v3833_v11 = vadd.f32 %v2484_v35, %v2454_v41  ;;  %v2219_v19 = vadd.f32 %v3764_v33, %v527_v18  ;;  %v2444_v20 = vmax.f32 %v2256_v1, 0.0 }
 0x1b9   : > { %v2260_v58 = vadd.f32 %v2259_v50, %v531_v23  ;;  %v3841_v32 = vadd.f32 %v2488_v36, %v2455_v28  ;;  %v3843_v27 = vadd.f32 %v2496_v61, %v2457_v49  ;;  %v547_v37 = vrot.slane %v3759_v30, %v3727_v60 }
 0x1ba   : > { %v555_v35 = vrot.slane %v3759_v30, %v522_v8  ;;  %v2577_v63 = vadd.f32 %v2508_v45, %v2442_v51  ;;  %v2578_v56 = vadd.f32 %v2512_v46, %v2443_v55  ;;  %v2445_v52 = vmax.f32 %v2258_v5, 0.0 }
 0x1bb   : > { %v2262_v38 = vadd.f32 %v2261_v14, %v535_v39  ;;  %v2540_v33 = vrot.slane %v3766_v34, %v522_v8  ;;  %v559_v18 = vrot.slane %v3759_v30, %v3798_v9  ;;  %v2460_v36 = vmax.f32 %v2217_v15, 0.0 }
 0x1bc   : > { %v2461_v23 = vmax.f32 %v2219_v19, 0.0  ;;  %v2579_v61 = vadd.f32 %v2516_v26, %v2444_v20  ;;  %v2462_v24 = vmax.f32 %v2260_v58, 0.0  ;;  %v2536_v60 = vrot.slane %v3766_v34, %v3732_v62 }
 0x1bd   : > { %v2544_v8 = vrot.slane %v3766_v34, %v3798_v9  ;;  %v2607_v42 = vmax.f32 %v3825_v31, %v2577_v63  ;;  %v2608_v44 = vmax.f32 %v3831_v10, %v2578_v56  ;;  %v2580_v50 = vadd.f32 %v2520_v6, %v2445_v52 }
 0x1be   : > { %v2463_v30 = vmax.f32 %v2262_v38, 0.0  ;;  %v2595_v14 = vadd.f32 %v2508_v45, %v2460_v36  ;;  %v2596_v15 = vadd.f32 %v2512_v46, %v2461_v23  ;;  %v2609_v62 = vmax.f32 %v3827_v7, %v2579_v61 }
 0x1bf   : > { %v2597_v19 = vadd.f32 %v2516_v26, %v2462_v24  ;;  %v2610_v63 = vmax.f32 %v3835_v3, %v2580_v50 }
 0x1c0   : > { %v2598_v56 = vadd.f32 %v2520_v6, %v2463_v30  ;;  %v2614_v30 = vmax.f32 %v3841_v32, %v2596_v15 }
 0x1ea   : > { %v2341_v25 = vpop.f32.mrf.mxu0 }
 0x1eb   : > { %v2384_v40 = vpop.f32.mrf.mxu1  ;;  %v2342_v41 = vadd.f32 %v2341_v25, %v547_v37  ;;  %v2613_v25 = vmax.f32 %v3833_v11, %v2595_v14 }
 0x1ec   : > { %v2385_v39 = vadd.f32 %v2384_v40, %v555_v35  ;;  %v2343_v1 = vpop.f32.mrf.mxu0  ;;  %v2615_v40 = vmax.f32 %v3837_v12, %v2597_v19 }
 0x1ed   : > { %v2386_v28 = vpop.f32.mrf.mxu1  ;;  %v2448_v49 = vmax.f32 %v2342_v41, 0.0  ;;  %v2344_v55 = vadd.f32 %v2343_v1, %v551_v16 }
 0x1ee   : > { %v2450_v51 = vmax.f32 %v2385_v39, 0.0  ;;  %v2387_v5 = vadd.f32 %v2386_v28, %v559_v18  ;;  %v2345_v20 = vpop.f32.mrf.mxu0 }
 0x1ef   : > { %v2388_v34 = vpop.f32.mrf.mxu1  ;;  %v2583_v9 = vadd.f32 %v2532_v29, %v2448_v49  ;;  %v2449_v58 = vmax.f32 %v2344_v55, 0.0  ;;  %v2346_v45 = vadd.f32 %v2345_v20, %v547_v37  ;;  %v2477_v49 = vld [vmem:[#allocation4 + $0x21] ss:$2 sm:$0x3] }
 0x1f0   : > { %v2585_v31 = vadd.f32 %v2540_v33, %v2450_v51  ;;  %v2451_v10 = vmax.f32 %v2387_v5, 0.0  ;;  %v2389_v46 = vadd.f32 %v2388_v34, %v555_v35  ;;  %v2347_v7 = vpop.f32.mrf.mxu0  ;;  %v2548_v55 = vrot.slane %v2477_v49, %v3788_v2 }
 0x1f1   : > { %v2390_v26 = vpop.f32.mrf.mxu1  ;;  %v2619_v52 = vmax.f32 %v2607_v42, %v2583_v9  ;;  %v2584_v36 = vadd.f32 %v2536_v60, %v2449_v58  ;;  %v2466_v61 = vmax.f32 %v2346_v45, 0.0  ;;  %v2348_v6 = vadd.f32 %v2347_v7, %v551_v16 }
 0x1f2   : > { %v2621_v38 = vmax.f32 %v2609_v62, %v2585_v31  ;;  %v2586_v23 = vadd.f32 %v2544_v8, %v2451_v10  ;;  %v2468_v24 = vmax.f32 %v2389_v46, 0.0  ;;  %v2391_v3 = vadd.f32 %v2390_v26, %v559_v18 }
 0x1f3   : > { %2631 = vst [vmem:[%s3867_s10] sm:$0xff] %v2619_v52  ;;  %v2620_v37 = vmax.f32 %v2608_v44, %v2584_v36  ;;  %v2601_v41 = vadd.f32 %v2532_v29, %v2466_v61  ;;  %v2467_v42 = vmax.f32 %v2348_v6, 0.0  ;;  %v2616_v16 = vmax.f32 %v3843_v27, %v2598_v56  ;;  %v492_v29 = vld [vmem:[#allocation4 + $0x20] ss:$2 sm:$0x3] }
 0x1f4   : > { %2633 = vst [vmem:[%s3867_s10 + $0x10] sm:$0xff] %v2621_v38  ;;  %v2622_v35 = vmax.f32 %v2610_v63, %v2586_v23  ;;  %v2603_v39 = vadd.f32 %v2540_v33, %v2468_v24  ;;  %v2469_v50 = vmax.f32 %v2391_v3, 0.0  ;;  %v563_v33 = vrot.slane %v492_v29, %v3788_v2 }
 0x1f5   : > { %2632 = vst [vmem:[%s3867_s10 + $0x8] sm:$0xff] %v2620_v37  ;;  %v2625_v11 = vmax.f32 %v2613_v25, %v2601_v41  ;;  %v2602_v18 = vadd.f32 %v2536_v60, %v2467_v42  ;;  %v567_v32 = vrot.slane %v492_v29, %v3791_v4  ;;  %v2552_v14 = vrot.slane %v2477_v49, %v3791_v4 }
 0x1f6   : > { %2634 = vst [vmem:[%s3867_s10 + $0x18] sm:$0xff] %v2622_v35  ;;  %v2627_v12 = vmax.f32 %v2615_v40, %v2603_v39  ;;  %v2604_v1 = vadd.f32 %v2544_v8, %v2469_v50 }
 0x1f7   : > { %2637 = vst [vmem:[%s3867_s10 + $0x30] sm:$0xff] %v2625_v11  ;;  %v2626_v44 = vmax.f32 %v2614_v30, %v2602_v18 }
 0x1f8   : > { %2639 = vst [vmem:[%s3867_s10 + $0x40] sm:$0xff] %v2627_v12  ;;  %v2628_v28 = vmax.f32 %v2616_v16, %v2604_v1 }
 0x1f9   : > { %2638 = vst [vmem:[%s3867_s10 + $0x38] sm:$0xff] %v2626_v44 }
 0x1fa   : > { %2640 = vst [vmem:[%s3867_s10 + $0x48] sm:$0xff] %v2628_v28 }
 0x22a   : > { %v2427_v51 = vpop.f32.mrf.mxu0 }
 0x22b   : > { %v2428_v27 = vadd.f32 %v2427_v51, %v563_v33 }
 0x22c   : > { %v2429_v5 = vpop.f32.mrf.mxu0 }
 0x22d   : > { %v2452_v60 = vmax.f32 %v2428_v27, 0.0  ;;  %v2430_v8 = vadd.f32 %v2429_v5, %v567_v32 }
 0x22e   : > { %v2431_v15 = vpop.f32.mrf.mxu0 }
 0x22f   : > { %v2587_v62 = vadd.f32 %v2548_v55, %v2452_v60  ;;  %v2453_v19 = vmax.f32 %v2430_v8, 0.0  ;;  %v2432_v20 = vadd.f32 %v2431_v15, %v563_v33 }
 0x230   : > { %v2433_v34 = vpop.f32.mrf.mxu0 }
 0x231   : > { %v2623_v9 = vmax.f32 %v2611_v47, %v2587_v62  ;;  %v2588_v31 = vadd.f32 %v2552_v14, %v2453_v19  ;;  %v2470_v58 = vmax.f32 %v2432_v20, 0.0  ;;  %v2434_v2 = vadd.f32 %v2433_v34, %v567_v32 }
 0x233   : > { %2635 = vst [vmem:[%s3867_s10 + $0x20] sm:$0xff] %v2623_v9  ;;  %v2624_v10 = vmax.f32 %v2612_v53, %v2588_v31  ;;  %v2605_v4 = vadd.f32 %v2548_v55, %v2470_v58  ;;  %v2471_v63 = vmax.f32 %v2434_v2, 0.0 }
 0x235   : > { %2636 = vst [vmem:[%s3867_s10 + $0x28] sm:$0xff] %v2624_v10  ;;  %v2629_v56 = vmax.f32 %v2617_v57, %v2605_v4  ;;  %v2606_v45 = vadd.f32 %v2552_v14, %v2471_v63 }
 0x237   : > { %2641 = vst [vmem:[%s3867_s10 + $0x50] sm:$0xff] %v2629_v56  ;;  %v2630_v13 = vmax.f32 %v2618_v0, %v2606_v45 }
 0x239   : > { %2642 = vst [vmem:[%s3867_s10 + $0x58] sm:$0xff] %v2630_v13 }
 0x23a PF: > { %s15_s12 = sadd.s32 1, %s3574_s12  }
 0x23b   : > { %p12_p3 = scmp.ge.s32.totalorder %s15_s12, 4  }
 0x23d   :  { %14 = sbr.rel (!%p12_p3) target bundleno = 2 (0x2), region = 76 }
 0x242   :  { %2667 = vsyncpa [#allocation3], 1 }
 0x243   :  { %2669 = vsyncpa [#allocation3 + $0x1], 1 }
 0x244   :  { %2670 = vsyncpa [#allocation5], 1 }

</bundles_post_ra>
